<compile_context>
chip_gen: v7x
topology: tpu7x:2x2x1
jax: 0.10.0
libtpu: 0.0.40
codegen_flags: <defaults>
</compile_context>

<pallas_src>
import functools

import jax
import jax.numpy as jnp
import numpy as np
from jax.experimental import pallas as pl
from jax.experimental.pallas import tpu as pltpu


def ptrnet2_kernel(x_ref, w_emb_ref, w_ih_ref, w_hh_ref, b_lstm_ref,
                   vec_ref, wq_ref, wconv_ref, b_att_ref, fc1_ref, fc2_ref,
                   out_ref,
                   g_in_scr, enc_scr, *, n_process, mm_dtype):
    S, B, P = x_ref.shape
    H = enc_scr.shape[2]

    def dot_t(a, w):
        # a @ w.T (contract last axis of `a` with axis 1 of `w`), fp32 accumulate.
        return jax.lax.dot_general(
            a.astype(mm_dtype), w.astype(mm_dtype),
            (((a.ndim - 1,), (1,)), ((), ())),
            preferred_element_type=jnp.float32)

    # ---- Hoisted (time-invariant) work: one batched matmul each over all S*B
    # rows, instead of per-time-step matmuls inside the recurrence. ----
    w_emb = w_emb_ref[...]                               # (E, P)
    w_ih = w_ih_ref[...]                                 # (4H, E)  gate order i,f,g,o
    e_all = dot_t(x_ref[...], w_emb)                     # (S, B, E)   Embedding (no bias)
    g_in_scr[...] = dot_t(e_all, w_ih) + b_lstm_ref[...][None, :, :]   # (S, B, 4H)

    w_hh = w_hh_ref[...]                                 # (4H, H)

    # Per-gate lane mask, hoisted out of the time loop (tanh lanes = gate "g").
    lane = jax.lax.broadcasted_iota(jnp.int32, (B, 4 * H), 1)
    g_mask = (lane >= 2 * H) & (lane < 3 * H)

    # ---- LSTM recurrence (Encoder, hidden=None -> zero init). Statically
    # unrolled; h/c live in vregs (trip count & body are tiny, so live-range
    # growth is bounded). ----
    h = jnp.zeros((B, H), jnp.float32)
    c = jnp.zeros((B, H), jnp.float32)
    for t in range(S):
        gates = g_in_scr[t] + dot_t(h, w_hh)             # (B, 4H)
        act = jnp.where(g_mask, jnp.tanh(gates), jax.nn.sigmoid(gates))
        i_g = act[:, 0:H]
        f_g = act[:, H:2 * H]
        g_g = act[:, 2 * H:3 * H]
        o_g = act[:, 3 * H:4 * H]
        c = f_g * c + i_g * g_g
        h = o_g * jnp.tanh(c)
        enc_scr[t] = h                                   # enc_h time step t

    enc = enc_scr[...]                                   # (S, B, H) == ref
    wconv = wconv_ref[...]                               # (H, H)  Conv1d k=1 weight
    # u2 (+ folded biases bconv + bq) is query-independent -> computed once.
    u2 = dot_t(enc, wconv) + b_att_ref[...][None, :, :]  # (S, B, H)

    vec = vec_ref[...]                                   # (1, H)
    wq = wq_ref[...]                                     # (H, H)

    # ---- n_process glimpses ----
    query = h                                            # (B, H) == h[-1]
    for _ in range(n_process):
        u1 = dot_t(query, wq)                            # (B, H)   (bias folded into u2)
        th = jnp.tanh(u1[None, :, :] + u2)               # (S, B, H)
        u = dot_t(th, vec)                               # (S, B, 1) score: MXU contraction over H
        m = jnp.max(u, axis=0, keepdims=True)            # softmax over the block axis
        ex = jnp.exp(u - m)
        a = ex / jnp.sum(ex, axis=0, keepdims=True)      # (S, B, 1)
        query = jnp.sum(a * enc, axis=0)                 # (B, H)  attention-weighted ref

    # ---- final2FC: Linear(H,H,no bias) -> ReLU -> Linear(H,1,no bias) ----
    hid = jnp.maximum(dot_t(query, fc1_ref[...]), 0.0)   # (B, H)
    out_ref[...] = dot_t(hid, fc2_ref[...])              # (B, 1)


def make_params(key, P, E, H, init_min=-0.08, init_max=0.08):
    """Shapes mirror PtrNet2.__init__; all params ~ U(init_min, init_max)."""
    ks = jax.random.split(key, 12)
    u = lambda k, s: jax.random.uniform(k, s, jnp.float32, init_min, init_max)
    return {
        'w_emb': u(ks[0], (E, P)),        # Embedding (Linear, no bias)
        'w_ih':  u(ks[1], (4 * H, E)),    # LSTM weight_ih_l0
        'w_hh':  u(ks[2], (4 * H, H)),    # LSTM weight_hh_l0
        'b_ih':  u(ks[3], (4 * H,)),      # LSTM bias_ih_l0
        'b_hh':  u(ks[4], (4 * H,)),      # LSTM bias_hh_l0
        'vec':   u(ks[5], (H,)),          # Vec
        'wq':    u(ks[6], (H, H)),        # W_q weight
        'bq':    u(ks[7], (H,)),          # W_q bias
        'wconv': u(ks[8], (H, H, 1)),     # W_ref Conv1d weight
        'bconv': u(ks[9], (H,)),          # W_ref Conv1d bias
        'fc1':   u(ks[10], (H, H)),       # final2FC[0]
        'fc2':   u(ks[11], (1, H)),       # final2FC[2]
    }


def ptrnet2_forward(x, params, n_process, *, batch_block=None,
                    mm_dtype=jnp.float32):
    """batch_block: batch rows per grid block. Default = full batch (grid=(1,)).
    On v7x set batch_block = B // 2 (keep it a multiple of 8 at real shapes) so
    the two TensorCores each take a batch shard via the "parallel" grid axis.
    mm_dtype: pass jnp.bfloat16 at production sizes for MXU-native operands."""
    B, S, P = x.shape
    H = params['wq'].shape[0]
    if batch_block is None:
        batch_block = B
    assert B % batch_block == 0
    n_blocks = B // batch_block

    x_t = jnp.transpose(x, (1, 0, 2)).astype(jnp.float32)        # (S, B, P)

    b_lstm = (params['b_ih'] + params['b_hh']).reshape(1, 4 * H)
    vec = params['vec'].reshape(1, H)
    wconv = params['wconv'].reshape(H, H)
    b_att = (params['bconv'] + params['bq']).reshape(1, H)       # fold bq + bconv once
    weights = (params['w_emb'], params['w_ih'], params['w_hh'], b_lstm,
               vec, params['wq'], wconv, b_att, params['fc1'], params['fc2'])

    # Weights are small & 2-D: whole array resident each block (same block index
    # every grid step -> no re-copy).
    def rep_spec(a):
        return pl.BlockSpec(a.shape, lambda b: (0, 0))

    kernel = functools.partial(ptrnet2_kernel, n_process=n_process,
                               mm_dtype=mm_dtype)
    out = pl.pallas_call(
        kernel,
        out_shape=jax.ShapeDtypeStruct((B, 1), jnp.float32),
        grid=(n_blocks,),
        in_specs=[pl.BlockSpec((S, batch_block, P), lambda b: (0, b, 0))]
                 + [rep_spec(w) for w in weights],
        out_specs=pl.BlockSpec((batch_block, 1), lambda b: (b, 0)),
        scratch_shapes=[
            pltpu.VMEM((S, batch_block, 4 * H), jnp.float32),   # hoisted input-gate proj
            pltpu.VMEM((S, batch_block, H), jnp.float32),       # enc_h (time-major)
        ],
        compiler_params=pltpu.CompilerParams(
            dimension_semantics=("parallel",),
            # v5e's default scoped limit is 16 MiB; raise explicitly. At real
            # S/B/H, budget enc + u2/th temporaries against v7x's 64 MiB VMEM.
            vmem_limit_bytes=32 * 1024 * 1024),
    )(x_t, *weights)
    return out[:, 0]                                             # (B,)


def ptrnet2_ref(x, params, n_process):
    """Pure-JAX reference mirroring the PyTorch module exactly (fp32)."""
    B, S, P = x.shape
    H = params['wq'].shape[0]
    emb = jnp.einsum('bsp,ep->bse', x, params['w_emb'])
    h = jnp.zeros((B, H), jnp.float32)
    c = jnp.zeros((B, H), jnp.float32)
    enc = []
    for t in range(S):
        gates = (emb[:, t, :] @ params['w_ih'].T + h @ params['w_hh'].T
                 + params['b_ih'] + params['b_hh'])
        i_g = jax.nn.sigmoid(gates[:, :H])
        f_g = jax.nn.sigmoid(gates[:, H:2 * H])
        g_g = jnp.tanh(gates[:, 2 * H:3 * H])
        o_g = jax.nn.sigmoid(gates[:, 3 * H:])
        c = f_g * c + i_g * g_g
        h = o_g * jnp.tanh(c)
        enc.append(h)
    ref = jnp.stack(enc, axis=1)                                  # (B, S, H)
    query = h
    u2 = jnp.einsum('bsi,oi->bso', ref, params['wconv'][:, :, 0]) + params['bconv']
    for _ in range(n_process):
        u1 = query @ params['wq'].T + params['bq']
        u = jnp.einsum('h,bsh->bs', params['vec'], jnp.tanh(u1[:, None, :] + u2))
        a = jax.nn.softmax(u, axis=1)
        query = jnp.einsum('bs,bsh->bh', a, ref)
    hid = jnp.maximum(query @ params['fc1'].T, 0.0)
    return (hid @ params['fc2'].T)[:, 0]


if __name__ == "__main__":
    # small shapes consistent with the forward:
    #   x: (batch, block_num, process_num); n_embedding = n_hidden = 32
    B, S, P, E, H = 2, 8, 4, 32, 32
    N_PROCESS = 3

    key = jax.random.PRNGKey(0)
    kx, kp = jax.random.split(key)
    x = jax.random.uniform(kx, (B, S, P), jnp.float32)
    params = make_params(kp, P, E, H)

    pred = ptrnet2_forward(x, params, N_PROCESS)
    pred = jax.block_until_ready(pred)

    ref = ptrnet2_ref(x, params, N_PROCESS)
    np.testing.assert_allclose(np.asarray(pred), np.asarray(ref),
                               rtol=1e-3, atol=1e-4)
    print("KERNEL_OK")
</pallas_src>

<mosaic_0001>
module attributes {stable_mosaic.version = 11 : i64} {
  func.func @ptrnet2_kernel(%arg0: i32, %arg1: memref<8x2x4xf32, #tpu.memory_space<vmem>>, %arg2: memref<32x4xf32, #tpu.memory_space<vmem>>, %arg3: memref<128x32xf32, #tpu.memory_space<vmem>>, %arg4: memref<128x32xf32, #tpu.memory_space<vmem>>, %arg5: memref<1x128xf32, #tpu.memory_space<vmem>>, %arg6: memref<1x32xf32, #tpu.memory_space<vmem>>, %arg7: memref<32x32xf32, #tpu.memory_space<vmem>>, %arg8: memref<32x32xf32, #tpu.memory_space<vmem>>, %arg9: memref<1x32xf32, #tpu.memory_space<vmem>>, %arg10: memref<32x32xf32, #tpu.memory_space<vmem>>, %arg11: memref<1x32xf32, #tpu.memory_space<vmem>>, %arg12: memref<2x1xf32, #tpu.memory_space<vmem>>, %arg13: memref<8x2x128xf32, #tpu.memory_space<vmem>>, %arg14: memref<8x2x32xf32, #tpu.memory_space<vmem>>) attributes {dimension_semantics = [#tpu.dimension_semantics<parallel>], iteration_bounds = array<i64: 1>, scalar_prefetch = 0 : i64, scratch_operands = 2 : i64, tpu.core_type = #tpu.core_type<tc>, window_params = [{transform_indices = @transform_0, window_bounds = array<i64: 8, 2, 4>}, {pipeline_mode = #tpu.pipeline_mode<synchronous>, transform_indices = @transform_1, window_bounds = array<i64: 32, 4>}, {pipeline_mode = #tpu.pipeline_mode<synchronous>, transform_indices = @transform_2, window_bounds = array<i64: 128, 32>}, {pipeline_mode = #tpu.pipeline_mode<synchronous>, transform_indices = @transform_3, window_bounds = array<i64: 128, 32>}, {pipeline_mode = #tpu.pipeline_mode<synchronous>, transform_indices = @transform_4, window_bounds = array<i64: 1, 128>}, {pipeline_mode = #tpu.pipeline_mode<synchronous>, transform_indices = @transform_5, window_bounds = array<i64: 1, 32>}, {pipeline_mode = #tpu.pipeline_mode<synchronous>, transform_indices = @transform_6, window_bounds = array<i64: 32, 32>}, {pipeline_mode = #tpu.pipeline_mode<synchronous>, transform_indices = @transform_7, window_bounds = array<i64: 32, 32>}, {pipeline_mode = #tpu.pipeline_mode<synchronous>, transform_indices = @transform_8, window_bounds = array<i64: 1, 32>}, {pipeline_mode = #tpu.pipeline_mode<synchronous>, transform_indices = @transform_9, window_bounds = array<i64: 32, 32>}, {pipeline_mode = #tpu.pipeline_mode<synchronous>, transform_indices = @transform_10, window_bounds = array<i64: 1, 32>}, {transform_indices = @transform_11, window_bounds = array<i64: 2, 1>}]} {
    %c0 = arith.constant 0 : index
    %c0_0 = arith.constant 0 : index
    %0 = vector.load %arg2[%c0, %c0_0] : memref<32x4xf32, #tpu.memory_space<vmem>>, vector<32x4xf32>
    %c0_1 = arith.constant 0 : index
    %c0_2 = arith.constant 0 : index
    %1 = vector.load %arg3[%c0_1, %c0_2] : memref<128x32xf32, #tpu.memory_space<vmem>>, vector<128x32xf32>
    %c0_3 = arith.constant 0 : index
    %c0_4 = arith.constant 0 : index
    %c0_5 = arith.constant 0 : index
    %2 = vector.load %arg1[%c0_3, %c0_4, %c0_5] : memref<8x2x4xf32, #tpu.memory_space<vmem>>, vector<8x2x4xf32>
    %cst = arith.constant dense<0.000000e+00> : vector<8x2x32xf32>
    %3 = tpu.matmul %2, %0, %cst {dimension_numbers = #tpu.dot_dimension_numbers<[2], [1], [0, 1], [0], [0, 0, 0, 1, 1, 0], [], []>} : vector<8x2x4xf32>, vector<32x4xf32>, vector<8x2x32xf32> -> vector<8x2x32xf32>
    %cst_6 = arith.constant dense<0.000000e+00> : vector<8x2x128xf32>
    %4 = tpu.matmul %3, %1, %cst_6 {dimension_numbers = #tpu.dot_dimension_numbers<[2], [1], [0, 1], [0], [0, 0, 0, 1, 1, 0], [], []>} : vector<8x2x32xf32>, vector<128x32xf32>, vector<8x2x128xf32> -> vector<8x2x128xf32>
    %c0_7 = arith.constant 0 : index
    %c0_8 = arith.constant 0 : index
    %5 = vector.load %arg5[%c0_7, %c0_8] : memref<1x128xf32, #tpu.memory_space<vmem>>, vector<1x128xf32>
    %6 = vector.shape_cast %5 : vector<1x128xf32> to vector<1x1x128xf32>
    %7 = vector.broadcast %6 : vector<1x1x128xf32> to vector<8x2x128xf32>
    %8 = arith.addf %4, %7 : vector<8x2x128xf32>
    %c0_9 = arith.constant 0 : index
    %c0_10 = arith.constant 0 : index
    %c0_11 = arith.constant 0 : index
    %9 = vector.load %arg13[%c0_9, %c0_10, %c0_11] : memref<8x2x128xf32, #tpu.memory_space<vmem>>, vector<8x2x128xf32>
    tpu.vector_store %arg13[%c0_9, %c0_10, %c0_11], %8 {strides = array<i32>} : memref<8x2x128xf32, #tpu.memory_space<vmem>>, vector<8x2x128xf32>,
    %c0_12 = arith.constant 0 : index
    %c0_13 = arith.constant 0 : index
    %10 = vector.load %arg4[%c0_12, %c0_13] : memref<128x32xf32, #tpu.memory_space<vmem>>, vector<128x32xf32>
    %11 = tpu.iota {dimensions = array<i32: 1>} : vector<2x128xi32>
    %c64_i32 = arith.constant 64 : i32
    %12 = vector.broadcast %c64_i32 : i32 to vector<2x128xi32>
    %13 = arith.cmpi sge, %11, %12 : vector<2x128xi32>
    %c96_i32 = arith.constant 96 : i32
    %14 = vector.broadcast %c96_i32 : i32 to vector<2x128xi32>
    %15 = arith.cmpi slt, %11, %14 : vector<2x128xi32>
    %16 = arith.andi %13, %15 : vector<2x128xi1>
    %cst_14 = arith.constant 0.000000e+00 : f32
    %17 = vector.broadcast %cst_14 : f32 to vector<2x32xf32>
    %cst_15 = arith.constant 0.000000e+00 : f32
    %18 = vector.broadcast %cst_15 : f32 to vector<2x32xf32>
    %c0_16 = arith.constant 0 : index
    %c0_17 = arith.constant 0 : index
    %c0_18 = arith.constant 0 : index
    %19 = vector.load %arg13[%c0_16, %c0_17, %c0_18] : memref<8x2x128xf32, #tpu.memory_space<vmem>>, vector<1x2x128xf32>
    %20 = vector.shape_cast %19 : vector<1x2x128xf32> to vector<2x128xf32>
    %cst_19 = arith.constant dense<0.000000e+00> : vector<2x128xf32>
    %21 = tpu.matmul %17, %10, %cst_19 {dimension_numbers = #tpu.dot_dimension_numbers<[1], [1], [0], [0], [0, 0, 1, 0], [], []>} : vector<2x32xf32>, vector<128x32xf32>, vector<2x128xf32> -> vector<2x128xf32>
    %22 = arith.addf %20, %21 : vector<2x128xf32>
    %23 = math.tanh %22 : vector<2x128xf32>
    %24 = arith.negf %22 : vector<2x128xf32>
    %25 = math.exp %24 : vector<2x128xf32>
    %cst_20 = arith.constant 1.000000e+00 : f32
    %26 = vector.broadcast %cst_20 : f32 to vector<2x128xf32>
    %27 = arith.addf %26, %25 : vector<2x128xf32>
    %28 = arith.divf %26, %27 : vector<2x128xf32>
    %29 = arith.select %16, %23, %28 : vector<2x128xi1>, vector<2x128xf32>
    %30 = vector.extract_strided_slice %29 {offsets = [0, 0], sizes = [2, 32], strides = [1, 1]} : vector<2x128xf32> to vector<2x32xf32>
    %31 = vector.extract_strided_slice %29 {offsets = [0, 32], sizes = [2, 32], strides = [1, 1]} : vector<2x128xf32> to vector<2x32xf32>
    %32 = vector.extract_strided_slice %29 {offsets = [0, 64], sizes = [2, 32], strides = [1, 1]} : vector<2x128xf32> to vector<2x32xf32>
    %33 = vector.extract_strided_slice %29 {offsets = [0, 96], sizes = [2, 32], strides = [1, 1]} : vector<2x128xf32> to vector<2x32xf32>
    %34 = arith.mulf %31, %18 : vector<2x32xf32>
    %35 = arith.mulf %30, %32 : vector<2x32xf32>
    %36 = arith.addf %34, %35 : vector<2x32xf32>
    %37 = math.tanh %36 : vector<2x32xf32>
    %38 = arith.mulf %33, %37 : vector<2x32xf32>
    %c0_21 = arith.constant 0 : index
    %c0_22 = arith.constant 0 : index
    %c0_23 = arith.constant 0 : index
    %39 = vector.load %arg14[%c0_21, %c0_22, %c0_23] : memref<8x2x32xf32, #tpu.memory_space<vmem>>, vector<1x2x32xf32>
    %40 = vector.shape_cast %39 : vector<1x2x32xf32> to vector<2x32xf32>
    %41 = vector.shape_cast %38 : vector<2x32xf32> to vector<1x2x32xf32>
    tpu.vector_store %arg14[%c0_21, %c0_22, %c0_23], %41 {strides = array<i32>} : memref<8x2x32xf32, #tpu.memory_space<vmem>>, vector<1x2x32xf32>,
    %c1 = arith.constant 1 : index
    %c0_24 = arith.constant 0 : index
    %c0_25 = arith.constant 0 : index
    %42 = vector.load %arg13[%c1, %c0_24, %c0_25] : memref<8x2x128xf32, #tpu.memory_space<vmem>>, vector<1x2x128xf32>
    %43 = vector.shape_cast %42 : vector<1x2x128xf32> to vector<2x128xf32>
    %cst_26 = arith.constant dense<0.000000e+00> : vector<2x128xf32>
    %44 = tpu.matmul %38, %10, %cst_26 {dimension_numbers = #tpu.dot_dimension_numbers<[1], [1], [0], [0], [0, 0, 1, 0], [], []>} : vector<2x32xf32>, vector<128x32xf32>, vector<2x128xf32> -> vector<2x128xf32>
    %45 = arith.addf %43, %44 : vector<2x128xf32>
    %46 = math.tanh %45 : vector<2x128xf32>
    %47 = arith.negf %45 : vector<2x128xf32>
    %48 = math.exp %47 : vector<2x128xf32>
    %cst_27 = arith.constant 1.000000e+00 : f32
    %49 = vector.broadcast %cst_27 : f32 to vector<2x128xf32>
    %50 = arith.addf %49, %48 : vector<2x128xf32>
    %51 = arith.divf %49, %50 : vector<2x128xf32>
    %52 = arith.select %16, %46, %51 : vector<2x128xi1>, vector<2x128xf32>
    %53 = vector.extract_strided_slice %52 {offsets = [0, 0], sizes = [2, 32], strides = [1, 1]} : vector<2x128xf32> to vector<2x32xf32>
    %54 = vector.extract_strided_slice %52 {offsets = [0, 32], sizes = [2, 32], strides = [1, 1]} : vector<2x128xf32> to vector<2x32xf32>
    %55 = vector.extract_strided_slice %52 {offsets = [0, 64], sizes = [2, 32], strides = [1, 1]} : vector<2x128xf32> to vector<2x32xf32>
    %56 = vector.extract_strided_slice %52 {offsets = [0, 96], sizes = [2, 32], strides = [1, 1]} : vector<2x128xf32> to vector<2x32xf32>
    %57 = arith.mulf %54, %36 : vector<2x32xf32>
    %58 = arith.mulf %53, %55 : vector<2x32xf32>
    %59 = arith.addf %57, %58 : vector<2x32xf32>
    %60 = math.tanh %59 : vector<2x32xf32>
    %61 = arith.mulf %56, %60 : vector<2x32xf32>
    %c1_28 = arith.constant 1 : index
    %c0_29 = arith.constant 0 : index
    %c0_30 = arith.constant 0 : index
    %62 = vector.load %arg14[%c1_28, %c0_29, %c0_30] : memref<8x2x32xf32, #tpu.memory_space<vmem>>, vector<1x2x32xf32>
    %63 = vector.shape_cast %62 : vector<1x2x32xf32> to vector<2x32xf32>
    %64 = vector.shape_cast %61 : vector<2x32xf32> to vector<1x2x32xf32>
    tpu.vector_store %arg14[%c1_28, %c0_29, %c0_30], %64 {strides = array<i32>} : memref<8x2x32xf32, #tpu.memory_space<vmem>>, vector<1x2x32xf32>,
    %c2 = arith.constant 2 : index
    %c0_31 = arith.constant 0 : index
    %c0_32 = arith.constant 0 : index
    %65 = vector.load %arg13[%c2, %c0_31, %c0_32] : memref<8x2x128xf32, #tpu.memory_space<vmem>>, vector<1x2x128xf32>
    %66 = vector.shape_cast %65 : vector<1x2x128xf32> to vector<2x128xf32>
    %cst_33 = arith.constant dense<0.000000e+00> : vector<2x128xf32>
    %67 = tpu.matmul %61, %10, %cst_33 {dimension_numbers = #tpu.dot_dimension_numbers<[1], [1], [0], [0], [0, 0, 1, 0], [], []>} : vector<2x32xf32>, vector<128x32xf32>, vector<2x128xf32> -> vector<2x128xf32>
    %68 = arith.addf %66, %67 : vector<2x128xf32>
    %69 = math.tanh %68 : vector<2x128xf32>
    %70 = arith.negf %68 : vector<2x128xf32>
    %71 = math.exp %70 : vector<2x128xf32>
    %cst_34 = arith.constant 1.000000e+00 : f32
    %72 = vector.broadcast %cst_34 : f32 to vector<2x128xf32>
    %73 = arith.addf %72, %71 : vector<2x128xf32>
    %74 = arith.divf %72, %73 : vector<2x128xf32>
    %75 = arith.select %16, %69, %74 : vector<2x128xi1>, vector<2x128xf32>
    %76 = vector.extract_strided_slice %75 {offsets = [0, 0], sizes = [2, 32], strides = [1, 1]} : vector<2x128xf32> to vector<2x32xf32>
    %77 = vector.extract_strided_slice %75 {offsets = [0, 32], sizes = [2, 32], strides = [1, 1]} : vector<2x128xf32> to vector<2x32xf32>
    %78 = vector.extract_strided_slice %75 {offsets = [0, 64], sizes = [2, 32], strides = [1, 1]} : vector<2x128xf32> to vector<2x32xf32>
    %79 = vector.extract_strided_slice %75 {offsets = [0, 96], sizes = [2, 32], strides = [1, 1]} : vector<2x128xf32> to vector<2x32xf32>
    %80 = arith.mulf %77, %59 : vector<2x32xf32>
    %81 = arith.mulf %76, %78 : vector<2x32xf32>
    %82 = arith.addf %80, %81 : vector<2x32xf32>
    %83 = math.tanh %82 : vector<2x32xf32>
    %84 = arith.mulf %79, %83 : vector<2x32xf32>
    %c2_35 = arith.constant 2 : index
    %c0_36 = arith.constant 0 : index
    %c0_37 = arith.constant 0 : index
    %85 = vector.load %arg14[%c2_35, %c0_36, %c0_37] : memref<8x2x32xf32, #tpu.memory_space<vmem>>, vector<1x2x32xf32>
    %86 = vector.shape_cast %85 : vector<1x2x32xf32> to vector<2x32xf32>
    %87 = vector.shape_cast %84 : vector<2x32xf32> to vector<1x2x32xf32>
    tpu.vector_store %arg14[%c2_35, %c0_36, %c0_37], %87 {strides = array<i32>} : memref<8x2x32xf32, #tpu.memory_space<vmem>>, vector<1x2x32xf32>,
    %c3 = arith.constant 3 : index
    %c0_38 = arith.constant 0 : index
    %c0_39 = arith.constant 0 : index
    %88 = vector.load %arg13[%c3, %c0_38, %c0_39] : memref<8x2x128xf32, #tpu.memory_space<vmem>>, vector<1x2x128xf32>
    %89 = vector.shape_cast %88 : vector<1x2x128xf32> to vector<2x128xf32>
    %cst_40 = arith.constant dense<0.000000e+00> : vector<2x128xf32>
    %90 = tpu.matmul %84, %10, %cst_40 {dimension_numbers = #tpu.dot_dimension_numbers<[1], [1], [0], [0], [0, 0, 1, 0], [], []>} : vector<2x32xf32>, vector<128x32xf32>, vector<2x128xf32> -> vector<2x128xf32>
    %91 = arith.addf %89, %90 : vector<2x128xf32>
    %92 = math.tanh %91 : vector<2x128xf32>
    %93 = arith.negf %91 : vector<2x128xf32>
    %94 = math.exp %93 : vector<2x128xf32>
    %cst_41 = arith.constant 1.000000e+00 : f32
    %95 = vector.broadcast %cst_41 : f32 to vector<2x128xf32>
    %96 = arith.addf %95, %94 : vector<2x128xf32>
    %97 = arith.divf %95, %96 : vector<2x128xf32>
    %98 = arith.select %16, %92, %97 : vector<2x128xi1>, vector<2x128xf32>
    %99 = vector.extract_strided_slice %98 {offsets = [0, 0], sizes = [2, 32], strides = [1, 1]} : vector<2x128xf32> to vector<2x32xf32>
    %100 = vector.extract_strided_slice %98 {offsets = [0, 32], sizes = [2, 32], strides = [1, 1]} : vector<2x128xf32> to vector<2x32xf32>
    %101 = vector.extract_strided_slice %98 {offsets = [0, 64], sizes = [2, 32], strides = [1, 1]} : vector<2x128xf32> to vector<2x32xf32>
    %102 = vector.extract_strided_slice %98 {offsets = [0, 96], sizes = [2, 32], strides = [1, 1]} : vector<2x128xf32> to vector<2x32xf32>
    %103 = arith.mulf %100, %82 : vector<2x32xf32>
    %104 = arith.mulf %99, %101 : vector<2x32xf32>
    %105 = arith.addf %103, %104 : vector<2x32xf32>
    %106 = math.tanh %105 : vector<2x32xf32>
    %107 = arith.mulf %102, %106 : vector<2x32xf32>
    %c3_42 = arith.constant 3 : index
    %c0_43 = arith.constant 0 : index
    %c0_44 = arith.constant 0 : index
    %108 = vector.load %arg14[%c3_42, %c0_43, %c0_44] : memref<8x2x32xf32, #tpu.memory_space<vmem>>, vector<1x2x32xf32>
    %109 = vector.shape_cast %108 : vector<1x2x32xf32> to vector<2x32xf32>
    %110 = vector.shape_cast %107 : vector<2x32xf32> to vector<1x2x32xf32>
    tpu.vector_store %arg14[%c3_42, %c0_43, %c0_44], %110 {strides = array<i32>} : memref<8x2x32xf32, #tpu.memory_space<vmem>>, vector<1x2x32xf32>,
    %c4 = arith.constant 4 : index
    %c0_45 = arith.constant 0 : index
    %c0_46 = arith.constant 0 : index
    %111 = vector.load %arg13[%c4, %c0_45, %c0_46] : memref<8x2x128xf32, #tpu.memory_space<vmem>>, vector<1x2x128xf32>
    %112 = vector.shape_cast %111 : vector<1x2x128xf32> to vector<2x128xf32>
    %cst_47 = arith.constant dense<0.000000e+00> : vector<2x128xf32>
    %113 = tpu.matmul %107, %10, %cst_47 {dimension_numbers = #tpu.dot_dimension_numbers<[1], [1], [0], [0], [0, 0, 1, 0], [], []>} : vector<2x32xf32>, vector<128x32xf32>, vector<2x128xf32> -> vector<2x128xf32>
    %114 = arith.addf %112, %113 : vector<2x128xf32>
    %115 = math.tanh %114 : vector<2x128xf32>
    %116 = arith.negf %114 : vector<2x128xf32>
    %117 = math.exp %116 : vector<2x128xf32>
    %cst_48 = arith.constant 1.000000e+00 : f32
    %118 = vector.broadcast %cst_48 : f32 to vector<2x128xf32>
    %119 = arith.addf %118, %117 : vector<2x128xf32>
    %120 = arith.divf %118, %119 : vector<2x128xf32>
    %121 = arith.select %16, %115, %120 : vector<2x128xi1>, vector<2x128xf32>
    %122 = vector.extract_strided_slice %121 {offsets = [0, 0], sizes = [2, 32], strides = [1, 1]} : vector<2x128xf32> to vector<2x32xf32>
    %123 = vector.extract_strided_slice %121 {offsets = [0, 32], sizes = [2, 32], strides = [1, 1]} : vector<2x128xf32> to vector<2x32xf32>
    %124 = vector.extract_strided_slice %121 {offsets = [0, 64], sizes = [2, 32], strides = [1, 1]} : vector<2x128xf32> to vector<2x32xf32>
    %125 = vector.extract_strided_slice %121 {offsets = [0, 96], sizes = [2, 32], strides = [1, 1]} : vector<2x128xf32> to vector<2x32xf32>
    %126 = arith.mulf %123, %105 : vector<2x32xf32>
    %127 = arith.mulf %122, %124 : vector<2x32xf32>
    %128 = arith.addf %126, %127 : vector<2x32xf32>
    %129 = math.tanh %128 : vector<2x32xf32>
    %130 = arith.mulf %125, %129 : vector<2x32xf32>
    %c4_49 = arith.constant 4 : index
    %c0_50 = arith.constant 0 : index
    %c0_51 = arith.constant 0 : index
    %131 = vector.load %arg14[%c4_49, %c0_50, %c0_51] : memref<8x2x32xf32, #tpu.memory_space<vmem>>, vector<1x2x32xf32>
    %132 = vector.shape_cast %131 : vector<1x2x32xf32> to vector<2x32xf32>
    %133 = vector.shape_cast %130 : vector<2x32xf32> to vector<1x2x32xf32>
    tpu.vector_store %arg14[%c4_49, %c0_50, %c0_51], %133 {strides = array<i32>} : memref<8x2x32xf32, #tpu.memory_space<vmem>>, vector<1x2x32xf32>,
    %c5 = arith.constant 5 : index
    %c0_52 = arith.constant 0 : index
    %c0_53 = arith.constant 0 : index
    %134 = vector.load %arg13[%c5, %c0_52, %c0_53] : memref<8x2x128xf32, #tpu.memory_space<vmem>>, vector<1x2x128xf32>
    %135 = vector.shape_cast %134 : vector<1x2x128xf32> to vector<2x128xf32>
    %cst_54 = arith.constant dense<0.000000e+00> : vector<2x128xf32>
    %136 = tpu.matmul %130, %10, %cst_54 {dimension_numbers = #tpu.dot_dimension_numbers<[1], [1], [0], [0], [0, 0, 1, 0], [], []>} : vector<2x32xf32>, vector<128x32xf32>, vector<2x128xf32> -> vector<2x128xf32>
    %137 = arith.addf %135, %136 : vector<2x128xf32>
    %138 = math.tanh %137 : vector<2x128xf32>
    %139 = arith.negf %137 : vector<2x128xf32>
    %140 = math.exp %139 : vector<2x128xf32>
    %cst_55 = arith.constant 1.000000e+00 : f32
    %141 = vector.broadcast %cst_55 : f32 to vector<2x128xf32>
    %142 = arith.addf %141, %140 : vector<2x128xf32>
    %143 = arith.divf %141, %142 : vector<2x128xf32>
    %144 = arith.select %16, %138, %143 : vector<2x128xi1>, vector<2x128xf32>
    %145 = vector.extract_strided_slice %144 {offsets = [0, 0], sizes = [2, 32], strides = [1, 1]} : vector<2x128xf32> to vector<2x32xf32>
    %146 = vector.extract_strided_slice %144 {offsets = [0, 32], sizes = [2, 32], strides = [1, 1]} : vector<2x128xf32> to vector<2x32xf32>
    %147 = vector.extract_strided_slice %144 {offsets = [0, 64], sizes = [2, 32], strides = [1, 1]} : vector<2x128xf32> to vector<2x32xf32>
    %148 = vector.extract_strided_slice %144 {offsets = [0, 96], sizes = [2, 32], strides = [1, 1]} : vector<2x128xf32> to vector<2x32xf32>
    %149 = arith.mulf %146, %128 : vector<2x32xf32>
    %150 = arith.mulf %145, %147 : vector<2x32xf32>
    %151 = arith.addf %149, %150 : vector<2x32xf32>
    %152 = math.tanh %151 : vector<2x32xf32>
    %153 = arith.mulf %148, %152 : vector<2x32xf32>
    %c5_56 = arith.constant 5 : index
    %c0_57 = arith.constant 0 : index
    %c0_58 = arith.constant 0 : index
    %154 = vector.load %arg14[%c5_56, %c0_57, %c0_58] : memref<8x2x32xf32, #tpu.memory_space<vmem>>, vector<1x2x32xf32>
    %155 = vector.shape_cast %154 : vector<1x2x32xf32> to vector<2x32xf32>
    %156 = vector.shape_cast %153 : vector<2x32xf32> to vector<1x2x32xf32>
    tpu.vector_store %arg14[%c5_56, %c0_57, %c0_58], %156 {strides = array<i32>} : memref<8x2x32xf32, #tpu.memory_space<vmem>>, vector<1x2x32xf32>,
    %c6 = arith.constant 6 : index
    %c0_59 = arith.constant 0 : index
    %c0_60 = arith.constant 0 : index
    %157 = vector.load %arg13[%c6, %c0_59, %c0_60] : memref<8x2x128xf32, #tpu.memory_space<vmem>>, vector<1x2x128xf32>
    %158 = vector.shape_cast %157 : vector<1x2x128xf32> to vector<2x128xf32>
    %cst_61 = arith.constant dense<0.000000e+00> : vector<2x128xf32>
    %159 = tpu.matmul %153, %10, %cst_61 {dimension_numbers = #tpu.dot_dimension_numbers<[1], [1], [0], [0], [0, 0, 1, 0], [], []>} : vector<2x32xf32>, vector<128x32xf32>, vector<2x128xf32> -> vector<2x128xf32>
    %160 = arith.addf %158, %159 : vector<2x128xf32>
    %161 = math.tanh %160 : vector<2x128xf32>
    %162 = arith.negf %160 : vector<2x128xf32>
    %163 = math.exp %162 : vector<2x128xf32>
    %cst_62 = arith.constant 1.000000e+00 : f32
    %164 = vector.broadcast %cst_62 : f32 to vector<2x128xf32>
    %165 = arith.addf %164, %163 : vector<2x128xf32>
    %166 = arith.divf %164, %165 : vector<2x128xf32>
    %167 = arith.select %16, %161, %166 : vector<2x128xi1>, vector<2x128xf32>
    %168 = vector.extract_strided_slice %167 {offsets = [0, 0], sizes = [2, 32], strides = [1, 1]} : vector<2x128xf32> to vector<2x32xf32>
    %169 = vector.extract_strided_slice %167 {offsets = [0, 32], sizes = [2, 32], strides = [1, 1]} : vector<2x128xf32> to vector<2x32xf32>
    %170 = vector.extract_strided_slice %167 {offsets = [0, 64], sizes = [2, 32], strides = [1, 1]} : vector<2x128xf32> to vector<2x32xf32>
    %171 = vector.extract_strided_slice %167 {offsets = [0, 96], sizes = [2, 32], strides = [1, 1]} : vector<2x128xf32> to vector<2x32xf32>
    %172 = arith.mulf %169, %151 : vector<2x32xf32>
    %173 = arith.mulf %168, %170 : vector<2x32xf32>
    %174 = arith.addf %172, %173 : vector<2x32xf32>
    %175 = math.tanh %174 : vector<2x32xf32>
    %176 = arith.mulf %171, %175 : vector<2x32xf32>
    %c6_63 = arith.constant 6 : index
    %c0_64 = arith.constant 0 : index
    %c0_65 = arith.constant 0 : index
    %177 = vector.load %arg14[%c6_63, %c0_64, %c0_65] : memref<8x2x32xf32, #tpu.memory_space<vmem>>, vector<1x2x32xf32>
    %178 = vector.shape_cast %177 : vector<1x2x32xf32> to vector<2x32xf32>
    %179 = vector.shape_cast %176 : vector<2x32xf32> to vector<1x2x32xf32>
    tpu.vector_store %arg14[%c6_63, %c0_64, %c0_65], %179 {strides = array<i32>} : memref<8x2x32xf32, #tpu.memory_space<vmem>>, vector<1x2x32xf32>,
    %c7 = arith.constant 7 : index
    %c0_66 = arith.constant 0 : index
    %c0_67 = arith.constant 0 : index
    %180 = vector.load %arg13[%c7, %c0_66, %c0_67] : memref<8x2x128xf32, #tpu.memory_space<vmem>>, vector<1x2x128xf32>
    %181 = vector.shape_cast %180 : vector<1x2x128xf32> to vector<2x128xf32>
    %cst_68 = arith.constant dense<0.000000e+00> : vector<2x128xf32>
    %182 = tpu.matmul %176, %10, %cst_68 {dimension_numbers = #tpu.dot_dimension_numbers<[1], [1], [0], [0], [0, 0, 1, 0], [], []>} : vector<2x32xf32>, vector<128x32xf32>, vector<2x128xf32> -> vector<2x128xf32>
    %183 = arith.addf %181, %182 : vector<2x128xf32>
    %184 = math.tanh %183 : vector<2x128xf32>
    %185 = arith.negf %183 : vector<2x128xf32>
    %186 = math.exp %185 : vector<2x128xf32>
    %cst_69 = arith.constant 1.000000e+00 : f32
    %187 = vector.broadcast %cst_69 : f32 to vector<2x128xf32>
    %188 = arith.addf %187, %186 : vector<2x128xf32>
    %189 = arith.divf %187, %188 : vector<2x128xf32>
    %190 = arith.select %16, %184, %189 : vector<2x128xi1>, vector<2x128xf32>
    %191 = vector.extract_strided_slice %190 {offsets = [0, 0], sizes = [2, 32], strides = [1, 1]} : vector<2x128xf32> to vector<2x32xf32>
    %192 = vector.extract_strided_slice %190 {offsets = [0, 32], sizes = [2, 32], strides = [1, 1]} : vector<2x128xf32> to vector<2x32xf32>
    %193 = vector.extract_strided_slice %190 {offsets = [0, 64], sizes = [2, 32], strides = [1, 1]} : vector<2x128xf32> to vector<2x32xf32>
    %194 = vector.extract_strided_slice %190 {offsets = [0, 96], sizes = [2, 32], strides = [1, 1]} : vector<2x128xf32> to vector<2x32xf32>
    %195 = arith.mulf %192, %174 : vector<2x32xf32>
    %196 = arith.mulf %191, %193 : vector<2x32xf32>
    %197 = arith.addf %195, %196 : vector<2x32xf32>
    %198 = math.tanh %197 : vector<2x32xf32>
    %199 = arith.mulf %194, %198 : vector<2x32xf32>
    %c7_70 = arith.constant 7 : index
    %c0_71 = arith.constant 0 : index
    %c0_72 = arith.constant 0 : index
    %200 = vector.load %arg14[%c7_70, %c0_71, %c0_72] : memref<8x2x32xf32, #tpu.memory_space<vmem>>, vector<1x2x32xf32>
    %201 = vector.shape_cast %200 : vector<1x2x32xf32> to vector<2x32xf32>
    %202 = vector.shape_cast %199 : vector<2x32xf32> to vector<1x2x32xf32>
    tpu.vector_store %arg14[%c7_70, %c0_71, %c0_72], %202 {strides = array<i32>} : memref<8x2x32xf32, #tpu.memory_space<vmem>>, vector<1x2x32xf32>,
    %c0_73 = arith.constant 0 : index
    %c0_74 = arith.constant 0 : index
    %c0_75 = arith.constant 0 : index
    %203 = vector.load %arg14[%c0_73, %c0_74, %c0_75] : memref<8x2x32xf32, #tpu.memory_space<vmem>>, vector<8x2x32xf32>
    %c0_76 = arith.constant 0 : index
    %c0_77 = arith.constant 0 : index
    %204 = vector.load %arg8[%c0_76, %c0_77] : memref<32x32xf32, #tpu.memory_space<vmem>>, vector<32x32xf32>
    %cst_78 = arith.constant dense<0.000000e+00> : vector<8x2x32xf32>
    %205 = tpu.matmul %203, %204, %cst_78 {dimension_numbers = #tpu.dot_dimension_numbers<[2], [1], [0, 1], [0], [0, 0, 0, 1, 1, 0], [], []>} : vector<8x2x32xf32>, vector<32x32xf32>, vector<8x2x32xf32> -> vector<8x2x32xf32>
    %c0_79 = arith.constant 0 : index
    %c0_80 = arith.constant 0 : index
    %206 = vector.load %arg9[%c0_79, %c0_80] : memref<1x32xf32, #tpu.memory_space<vmem>>, vector<1x32xf32>
    %207 = vector.shape_cast %206 : vector<1x32xf32> to vector<1x1x32xf32>
    %208 = vector.broadcast %207 : vector<1x1x32xf32> to vector<8x2x32xf32>
    %209 = arith.addf %205, %208 : vector<8x2x32xf32>
    %c0_81 = arith.constant 0 : index
    %c0_82 = arith.constant 0 : index
    %210 = vector.load %arg6[%c0_81, %c0_82] : memref<1x32xf32, #tpu.memory_space<vmem>>, vector<1x32xf32>
    %c0_83 = arith.constant 0 : index
    %c0_84 = arith.constant 0 : index
    %211 = vector.load %arg7[%c0_83, %c0_84] : memref<32x32xf32, #tpu.memory_space<vmem>>, vector<32x32xf32>
    %cst_85 = arith.constant dense<0.000000e+00> : vector<2x32xf32>
    %212 = tpu.matmul %199, %211, %cst_85 {dimension_numbers = #tpu.dot_dimension_numbers<[1], [1], [0], [0], [0, 0, 1, 0], [], []>} : vector<2x32xf32>, vector<32x32xf32>, vector<2x32xf32> -> vector<2x32xf32>
    %213 = vector.shape_cast %212 : vector<2x32xf32> to vector<1x2x32xf32>
    %214 = vector.broadcast %213 : vector<1x2x32xf32> to vector<8x2x32xf32>
    %215 = arith.addf %214, %209 : vector<8x2x32xf32>
    %216 = math.tanh %215 : vector<8x2x32xf32>
    %cst_86 = arith.constant dense<0.000000e+00> : vector<8x2x1xf32>
    %217 = tpu.matmul %216, %210, %cst_86 {dimension_numbers = #tpu.dot_dimension_numbers<[2], [1], [0, 1], [0], [0, 0, 0, 1, 1, 0], [], []>} : vector<8x2x32xf32>, vector<1x32xf32>, vector<8x2x1xf32> -> vector<8x2x1xf32>
    %cst_87 = arith.constant dense<0xFF800000> : vector<2x1xf32>
    %218 = vector.multi_reduction <maximumf>, %217, %cst_87 [0] : vector<8x2x1xf32> to vector<2x1xf32>
    %219 = vector.shape_cast %218 : vector<2x1xf32> to vector<1x2x1xf32>
    %220 = vector.broadcast %219 : vector<1x2x1xf32> to vector<8x2x1xf32>
    %221 = arith.subf %217, %220 : vector<8x2x1xf32>
    %222 = math.exp %221 : vector<8x2x1xf32>
    %cst_88 = arith.constant dense<0.000000e+00> : vector<2x1xf32>
    %223 = vector.multi_reduction <add>, %222, %cst_88 [0] : vector<8x2x1xf32> to vector<2x1xf32>
    %224 = vector.shape_cast %223 : vector<2x1xf32> to vector<1x2x1xf32>
    %225 = vector.broadcast %224 : vector<1x2x1xf32> to vector<8x2x1xf32>
    %226 = arith.divf %222, %225 : vector<8x2x1xf32>
    %227 = vector.broadcast %226 : vector<8x2x1xf32> to vector<8x2x32xf32>
    %228 = arith.mulf %227, %203 : vector<8x2x32xf32>
    %cst_89 = arith.constant dense<0.000000e+00> : vector<2x32xf32>
    %229 = vector.multi_reduction <add>, %228, %cst_89 [0] : vector<8x2x32xf32> to vector<2x32xf32>
    %cst_90 = arith.constant dense<0.000000e+00> : vector<2x32xf32>
    %230 = tpu.matmul %229, %211, %cst_90 {dimension_numbers = #tpu.dot_dimension_numbers<[1], [1], [0], [0], [0, 0, 1, 0], [], []>} : vector<2x32xf32>, vector<32x32xf32>, vector<2x32xf32> -> vector<2x32xf32>
    %231 = vector.shape_cast %230 : vector<2x32xf32> to vector<1x2x32xf32>
    %232 = vector.broadcast %231 : vector<1x2x32xf32> to vector<8x2x32xf32>
    %233 = arith.addf %232, %209 : vector<8x2x32xf32>
    %234 = math.tanh %233 : vector<8x2x32xf32>
    %cst_91 = arith.constant dense<0.000000e+00> : vector<8x2x1xf32>
    %235 = tpu.matmul %234, %210, %cst_91 {dimension_numbers = #tpu.dot_dimension_numbers<[2], [1], [0, 1], [0], [0, 0, 0, 1, 1, 0], [], []>} : vector<8x2x32xf32>, vector<1x32xf32>, vector<8x2x1xf32> -> vector<8x2x1xf32>
    %cst_92 = arith.constant dense<0xFF800000> : vector<2x1xf32>
    %236 = vector.multi_reduction <maximumf>, %235, %cst_92 [0] : vector<8x2x1xf32> to vector<2x1xf32>
    %237 = vector.shape_cast %236 : vector<2x1xf32> to vector<1x2x1xf32>
    %238 = vector.broadcast %237 : vector<1x2x1xf32> to vector<8x2x1xf32>
    %239 = arith.subf %235, %238 : vector<8x2x1xf32>
    %240 = math.exp %239 : vector<8x2x1xf32>
    %cst_93 = arith.constant dense<0.000000e+00> : vector<2x1xf32>
    %241 = vector.multi_reduction <add>, %240, %cst_93 [0] : vector<8x2x1xf32> to vector<2x1xf32>
    %242 = vector.shape_cast %241 : vector<2x1xf32> to vector<1x2x1xf32>
    %243 = vector.broadcast %242 : vector<1x2x1xf32> to vector<8x2x1xf32>
    %244 = arith.divf %240, %243 : vector<8x2x1xf32>
    %245 = vector.broadcast %244 : vector<8x2x1xf32> to vector<8x2x32xf32>
    %246 = arith.mulf %245, %203 : vector<8x2x32xf32>
    %cst_94 = arith.constant dense<0.000000e+00> : vector<2x32xf32>
    %247 = vector.multi_reduction <add>, %246, %cst_94 [0] : vector<8x2x32xf32> to vector<2x32xf32>
    %cst_95 = arith.constant dense<0.000000e+00> : vector<2x32xf32>
    %248 = tpu.matmul %247, %211, %cst_95 {dimension_numbers = #tpu.dot_dimension_numbers<[1], [1], [0], [0], [0, 0, 1, 0], [], []>} : vector<2x32xf32>, vector<32x32xf32>, vector<2x32xf32> -> vector<2x32xf32>
    %249 = vector.shape_cast %248 : vector<2x32xf32> to vector<1x2x32xf32>
    %250 = vector.broadcast %249 : vector<1x2x32xf32> to vector<8x2x32xf32>
    %251 = arith.addf %250, %209 : vector<8x2x32xf32>
    %252 = math.tanh %251 : vector<8x2x32xf32>
    %cst_96 = arith.constant dense<0.000000e+00> : vector<8x2x1xf32>
    %253 = tpu.matmul %252, %210, %cst_96 {dimension_numbers = #tpu.dot_dimension_numbers<[2], [1], [0, 1], [0], [0, 0, 0, 1, 1, 0], [], []>} : vector<8x2x32xf32>, vector<1x32xf32>, vector<8x2x1xf32> -> vector<8x2x1xf32>
    %cst_97 = arith.constant dense<0xFF800000> : vector<2x1xf32>
    %254 = vector.multi_reduction <maximumf>, %253, %cst_97 [0] : vector<8x2x1xf32> to vector<2x1xf32>
    %255 = vector.shape_cast %254 : vector<2x1xf32> to vector<1x2x1xf32>
    %256 = vector.broadcast %255 : vector<1x2x1xf32> to vector<8x2x1xf32>
    %257 = arith.subf %253, %256 : vector<8x2x1xf32>
    %258 = math.exp %257 : vector<8x2x1xf32>
    %cst_98 = arith.constant dense<0.000000e+00> : vector<2x1xf32>
    %259 = vector.multi_reduction <add>, %258, %cst_98 [0] : vector<8x2x1xf32> to vector<2x1xf32>
    %260 = vector.shape_cast %259 : vector<2x1xf32> to vector<1x2x1xf32>
    %261 = vector.broadcast %260 : vector<1x2x1xf32> to vector<8x2x1xf32>
    %262 = arith.divf %258, %261 : vector<8x2x1xf32>
    %263 = vector.broadcast %262 : vector<8x2x1xf32> to vector<8x2x32xf32>
    %264 = arith.mulf %263, %203 : vector<8x2x32xf32>
    %cst_99 = arith.constant dense<0.000000e+00> : vector<2x32xf32>
    %265 = vector.multi_reduction <add>, %264, %cst_99 [0] : vector<8x2x32xf32> to vector<2x32xf32>
    %c0_100 = arith.constant 0 : index
    %c0_101 = arith.constant 0 : index
    %266 = vector.load %arg10[%c0_100, %c0_101] : memref<32x32xf32, #tpu.memory_space<vmem>>, vector<32x32xf32>
    %cst_102 = arith.constant dense<0.000000e+00> : vector<2x32xf32>
    %267 = tpu.matmul %265, %266, %cst_102 {dimension_numbers = #tpu.dot_dimension_numbers<[1], [1], [0], [0], [0, 0, 1, 0], [], []>} : vector<2x32xf32>, vector<32x32xf32>, vector<2x32xf32> -> vector<2x32xf32>
    %cst_103 = arith.constant 0.000000e+00 : f32
    %268 = vector.broadcast %cst_103 : f32 to vector<2x32xf32>
    %269 = arith.maximumf %267, %268 : vector<2x32xf32>
    %c0_104 = arith.constant 0 : index
    %c0_105 = arith.constant 0 : index
    %270 = vector.load %arg11[%c0_104, %c0_105] : memref<1x32xf32, #tpu.memory_space<vmem>>, vector<1x32xf32>
    %cst_106 = arith.constant dense<0.000000e+00> : vector<2x1xf32>
    %271 = tpu.matmul %269, %270, %cst_106 {dimension_numbers = #tpu.dot_dimension_numbers<[1], [1], [0], [0], [0, 0, 1, 0], [], []>} : vector<2x32xf32>, vector<1x32xf32>, vector<2x1xf32> -> vector<2x1xf32>
    %c0_107 = arith.constant 0 : index
    %c0_108 = arith.constant 0 : index
    %272 = vector.load %arg12[%c0_107, %c0_108] : memref<2x1xf32, #tpu.memory_space<vmem>>, vector<2x1xf32>
    tpu.vector_store %arg12[%c0_107, %c0_108], %271 {strides = array<i32>} : memref<2x1xf32, #tpu.memory_space<vmem>>, vector<2x1xf32>,
    return
  }
  func.func @transform_0(%arg0: i32) -> (i32, i32, i32) {
    %c0_i32 = arith.constant 0 : i32
    %c0_i32_0 = arith.constant 0 : i32
    %c0_i32_1 = arith.constant 0 : i32
    return %c0_i32, %arg0, %c0_i32_0 : i32, i32, i32
  }
  func.func @transform_1(%arg0: i32) -> (i32, i32) {
    %c0_i32 = arith.constant 0 : i32
    %c0_i32_0 = arith.constant 0 : i32
    %c0_i32_1 = arith.constant 0 : i32
    return %c0_i32, %c0_i32_0 : i32, i32
  }
  func.func @transform_2(%arg0: i32) -> (i32, i32) {
    %c0_i32 = arith.constant 0 : i32
    %c0_i32_0 = arith.constant 0 : i32
    %c0_i32_1 = arith.constant 0 : i32
    return %c0_i32, %c0_i32_0 : i32, i32
  }
  func.func @transform_3(%arg0: i32) -> (i32, i32) {
    %c0_i32 = arith.constant 0 : i32
    %c0_i32_0 = arith.constant 0 : i32
    %c0_i32_1 = arith.constant 0 : i32
    return %c0_i32, %c0_i32_0 : i32, i32
  }
  func.func @transform_4(%arg0: i32) -> (i32, i32) {
    %c0_i32 = arith.constant 0 : i32
    %c0_i32_0 = arith.constant 0 : i32
    %c0_i32_1 = arith.constant 0 : i32
    return %c0_i32, %c0_i32_0 : i32, i32
  }
  func.func @transform_5(%arg0: i32) -> (i32, i32) {
    %c0_i32 = arith.constant 0 : i32
    %c0_i32_0 = arith.constant 0 : i32
    %c0_i32_1 = arith.constant 0 : i32
    return %c0_i32, %c0_i32_0 : i32, i32
  }
  func.func @transform_6(%arg0: i32) -> (i32, i32) {
    %c0_i32 = arith.constant 0 : i32
    %c0_i32_0 = arith.constant 0 : i32
    %c0_i32_1 = arith.constant 0 : i32
    return %c0_i32, %c0_i32_0 : i32, i32
  }
  func.func @transform_7(%arg0: i32) -> (i32, i32) {
    %c0_i32 = arith.constant 0 : i32
    %c0_i32_0 = arith.constant 0 : i32
    %c0_i32_1 = arith.constant 0 : i32
    return %c0_i32, %c0_i32_0 : i32, i32
  }
  func.func @transform_8(%arg0: i32) -> (i32, i32) {
    %c0_i32 = arith.constant 0 : i32
    %c0_i32_0 = arith.constant 0 : i32
    %c0_i32_1 = arith.constant 0 : i32
    return %c0_i32, %c0_i32_0 : i32, i32
  }
  func.func @transform_9(%arg0: i32) -> (i32, i32) {
    %c0_i32 = arith.constant 0 : i32
    %c0_i32_0 = arith.constant 0 : i32
    %c0_i32_1 = arith.constant 0 : i32
    return %c0_i32, %c0_i32_0 : i32, i32
  }
  func.func @transform_10(%arg0: i32) -> (i32, i32) {
    %c0_i32 = arith.constant 0 : i32
    %c0_i32_0 = arith.constant 0 : i32
    %c0_i32_1 = arith.constant 0 : i32
    return %c0_i32, %c0_i32_0 : i32, i32
  }
  func.func @transform_11(%arg0: i32) -> (i32, i32) {
    %c0_i32 = arith.constant 0 : i32
    %c0_i32_0 = arith.constant 0 : i32
    return %arg0, %c0_i32 : i32, i32
  }
}

</mosaic_0001>

<bundles_post_ra>
// kernel: tpu_custom_call.1
= control target key start
LH: loop header
LB: loop body
LE: loop exit
PB: predicated region body
PF: predicated region fallthrough
CT: control target
= control target key end

     0   :  { %vm108_vm0 = vcmask 31744   ;;  %v79_v0 = vlaneseq  ;;  %v4146_v4 = vmov 1983009808   ;;  %vm216_vm2 = vcmask 261120   ;;  %s4151_s22 = smov 32   ;;  %s5146_s1 = inlined_call_operand.vmem [shape: f32[32,4], index: 1, kind: input, shape index: {}]   ;;  %s5147_s0 = inlined_call_operand.vmem [shape: f32[8,2,4], index: 0, kind: input, shape index: {}]   ;;  %s5148_s2 = inlined_call_operand.vmem [shape: f32[128,32], index: 2, kind: input, shape index: {}]   ;;  %s5149_s3 = inlined_call_operand.vmem [shape: f32[128,32], index: 3, kind: input, shape index: {}]   ;;  %s5150_s4 = inlined_call_operand.vmem [shape: f32[1,128], index: 4, kind: input, shape index: {}]   ;;  %s5151_s7 = inlined_call_operand.vmem [shape: f32[32,32], index: 7, kind: input, shape index: {}]   ;;  %s5152_s6 = inlined_call_operand.vmem [shape: f32[32,32], index: 6, kind: input, shape index: {}]   ;;  %s5153_s8 = inlined_call_operand.vmem [shape: f32[1,32], index: 8, kind: input, shape index: {}]   ;;  %s5154_s5 = inlined_call_operand.vmem [shape: f32[1,32], index: 5, kind: input, shape index: {}]   ;;  %s5155_s9 = inlined_call_operand.vmem [shape: f32[32,32], index: 9, kind: input, shape index: {}]   ;;  %s5156_s10 = inlined_call_operand.vmem [shape: f32[1,32], index: 10, kind: input, shape index: {}]   ;;  %s5157_s11 = inlined_call_operand.vmem [shape: f32[2,1], index: 11, kind: output, shape index: {}]  }
   0x1   :  { %v38_v1 = vld [vmem:[%s5146_s1] sm:$0xff]  ;;  %v39_v2 = vld [vmem:[%s5146_s1 + $0x8] sm:$0xff]  ;;  %vm4225_vm1 = vmpackc.low %vm108_vm0, %vm108_vm0  ;;  %v77_v5 = vunpack.c.l.s4 %v4146_v4  ;;  %v4147_v39 = vmov 0.0|0.0   ;;  %vm4148_vm4 = vmmov 0   ;;  %vm571_vm8 = vcmask 254976  }
   0x2   :  { %v3599_v6 = vpack.c.bf16 %v39_v2, %v38_v1  ;;  %v40_v7 = vld [vmem:[%s5146_s1 + $0x10] sm:$0xff]  ;;  %v41_v8 = vld [vmem:[%s5146_s1 + $0x18] sm:$0xff]  ;;  %v58_v9 = vld [vmem:[%s5147_s0] sm:$0x3]  ;;  %v4239_v10 = vshrl.u32 %v79_v0, 7  ;;  %vm1806_vm9 = vcmask 1041408  }
   0x3   :  { %v3605_v11 = vpack.c.bf16 %v41_v8, %v40_v7  ;;  %v59_v12 = vld [vmem:[%s5147_s0 + $0x2] sm:$0x3]  ;;  %v60_v13 = vld [vmem:[%s5147_s0 + $0x4] sm:$0x3]  ;;  %v61_v14 = vld [vmem:[%s5147_s0 + $0x6] sm:$0x3]  ;;  %v78_v15 = vunpack.c.0.s8 %v77_v5 }
   0x4   :  { %3601 = vmatprep.subr.msk.bf16.mxu0 %vm4225_vm1, %v3599_v6  ;;  %v74_v16 = vcombine.low %v58_v9, %v59_v12  ;;  %v75_v17 = vcombine.low %v60_v13, %v61_v14  ;;  %v62_v18 = vld [vmem:[%s5147_s0 + $0x8] sm:$0x3]  ;;  %v63_v19 = vld [vmem:[%s5147_s0 + $0xa] sm:$0x3]  ;;  %v64_v20 = vld [vmem:[%s5147_s0 + $0xc] sm:$0x3] }
   0x5   :  { %3604 = vmatpush3.bf16.xpose.msk.msra.mxu0 %vm4225_vm1, %v3599_v6  ;;  %v4264_v21 = vsub.s32 %v78_v15, %v4239_v10  ;;  %v65_v22 = vld [vmem:[%s5147_s0 + $0xe] sm:$0x3]  ;;  %v42_v23 = vld [vmem:[%s5148_s2] sm:$0xff]  ;;  %vm4279_vm3 = vmpackc.low %vm216_vm2, %vm216_vm2  ;;  %v91_v32 = vcombine.low %v62_v18, %v63_v19  ;;  %v4149_v19 = vmov 0.0   ;;  %vm2825_vm10 = vcmask 1024  }
   0x6   :  { %v43_v24 = vld [vmem:[%s5148_s2 + $0x8] sm:$0xff]  ;;  %3607 = vmatprep.subr.msk.bf16.mxu0 %vm4225_vm1, %v3605_v11  ;;  %v44_v27 = vld [vmem:[%s5148_s2 + $0x10] sm:$0xff]  ;;  %v45_v28 = vld [vmem:[%s5148_s2 + $0x18] sm:$0xff]  ;;  %v92_v33 = vcombine.low %v64_v20, %v65_v22 }
   0x7   :  { %v3611_v25 = vpack.c.bf16 %v43_v24, %v42_v23  ;;  %v82_v29 = vrot.slane %v74_v16, %v4264_v21  ;;  %v89_v30 = vrot.slane %v75_v17, %v4264_v21  ;;  %v3617_v31 = vpack.c.bf16 %v45_v28, %v44_v27  ;;  %v46_v35 = vld [vmem:[%s5148_s2 + $0x20] sm:$0xff]  ;;  %v47_v36 = vld [vmem:[%s5148_s2 + $0x28] sm:$0xff]  ;;  %v48_v45 = vld [vmem:[%s5148_s2 + $0x30] sm:$0xff] }
   0x8   :  { %v99_v37 = vrot.slane %v91_v32, %v4264_v21  ;;  %v106_v38 = vrot.slane %v92_v33, %v4264_v21  ;;  %v398_v40 = vld [vmem:[%s5149_s3] sm:$0xff]  ;;  %v399_v41 = vld [vmem:[%s5149_s3 + $0x8] sm:$0xff]  ;;  %v3623_v42 = vpack.c.bf16 %v47_v36, %v46_v35  ;;  %v49_v46 = vld [vmem:[%s5148_s2 + $0x38] sm:$0xff] }
   0x9   :  { %3613 = vmatprep.subr.msk.bf16.mxu1 %vm4279_vm3, %v3611_v25  ;;  %v90_v34 = vcombine.low %v82_v29, %v89_v30  ;;  %v4317_v44 = vpack.c.bf16 %v399_v41, %v398_v40  ;;  %v400_v47 = vld [vmem:[%s5149_s3 + $0x10] sm:$0xff]  ;;  %v401_v48 = vld [vmem:[%s5149_s3 + $0x18] sm:$0xff]  ;;  %v3629_v49 = vpack.c.bf16 %v49_v46, %v48_v45  ;;  %v50_v51 = vld [vmem:[%s5148_s2 + $0x40] sm:$0xff] }
   0xa   :  { %3616 = vmatpush3.bf16.xpose.msk.msra.mxu1 %vm4279_vm3, %v3611_v25  ;;  %v107_v43 = vcombine.low %v99_v37, %v106_v38  ;;  %v4340_v50 = vpack.c.bf16 %v401_v48, %v400_v47  ;;  %v51_v52 = vld [vmem:[%s5148_s2 + $0x48] sm:$0xff]  ;;  %v402_v53 = vld [vmem:[%s5149_s3 + $0x20] sm:$0xff]  ;;  %v52_v57 = vld [vmem:[%s5148_s2 + $0x50] sm:$0xff] }
   0xb   :  { %3619 = vmatprep.subr.msk.bf16.mxu1 %vm4279_vm3, %v3617_v31  ;;  %3226 = vmatprep.mubr.msk.f32.mxu0 %vm108_vm0, %v90_v34  ;;  %v403_v54 = vld [vmem:[%s5149_s3 + $0x28] sm:$0xff]  ;;  %v3635_v55 = vpack.c.bf16 %v51_v52, %v50_v51  ;;  %v53_v58 = vld [vmem:[%s5148_s2 + $0x58] sm:$0xff]  ;;  %v404_v59 = vld [vmem:[%s5149_s3 + $0x30] sm:$0xff]  ;;  %v415_v52 = vand.u32 127, %v79_v0 }
   0xc   :  { %v4362_v56 = vpack.c.bf16 %v403_v54, %v402_v53  ;;  %v405_v60 = vld [vmem:[%s5149_s3 + $0x38] sm:$0xff]  ;;  %v3641_v61 = vpack.c.bf16 %v53_v58, %v52_v57  ;;  %v54_v63 = vld [vmem:[%s5148_s2 + $0x60] sm:$0xff]  ;;  %v55_v1 = vld [vmem:[%s5148_s2 + $0x68] sm:$0xff] }
   0xd   :  { %3610 = vmatpush3.bf16.xpose.msk.msra.mxu0 %vm4225_vm1, %v3605_v11  ;;  %v4384_v62 = vpack.c.bf16 %v405_v60, %v404_v59  ;;  %v406_v2 = vld [vmem:[%s5149_s3 + $0x40] sm:$0xff]  ;;  %v407_v3 = vld [vmem:[%s5149_s3 + $0x48] sm:$0xff]  ;;  %v3647_v4 = vpack.c.bf16 %v55_v1, %v54_v63  ;;  %v56_v6 = vld [vmem:[%s5148_s2 + $0x70] sm:$0xff]  ;;  %vm416_vm5 = vcmp.ge.s32.totalorder %v415_v52, 64  ;;  %vm417_vm6 = vcmp.lt.s32.totalorder %v415_v52, 96 }
   0xe   :  { %3659 = vmatprep.subr.bf16.mxu0 %v4147_v39  ;;  %v4406_v5 = vpack.c.bf16 %v407_v3, %v406_v2  ;;  %v57_v7 = vld [vmem:[%s5148_s2 + $0x78] sm:$0xff]  ;;  %v408_v8 = vld [vmem:[%s5149_s3 + $0x50] sm:$0xff]  ;;  %v410_v13 = vld [vmem:[%s5149_s3 + $0x60] sm:$0xff] }
   0xf   :  { %v409_v9 = vld [vmem:[%s5149_s3 + $0x58] sm:$0xff]  ;;  %v3653_v11 = vpack.c.bf16 %v57_v7, %v56_v6  ;;  %v411_v14 = vld [vmem:[%s5149_s3 + $0x68] sm:$0xff]  ;;  %v412_v16 = vld [vmem:[%s5149_s3 + $0x70] sm:$0xff] }
  0x10   :  { %v4428_v12 = vpack.c.bf16 %v409_v9, %v408_v8  ;;  %v4444_v15 = vpack.c.bf16 %v411_v14, %v410_v13  ;;  %v413_v17 = vld [vmem:[%s5149_s3 + $0x78] sm:$0xff]  ;;  %v2837_v25 = vld [vmem:[%s5150_s4] ss:$0 sm:$0xff]  ;;  %vm4545_vm7 = vmand %vm416_vm5, %vm417_vm6  ;;  %s4150_s4 = smov 64  }
  0x11   :  { %v4457_v18 = vpack.c.bf16 %v413_v17, %v412_v16  ;;  %v206_v27 = vcombine.low %v2837_v25, %v2837_v25 }
  0x12   :  { %3622 = vmatpush3.bf16.xpose.msk.msra.mxu1 %vm4279_vm3, %v3617_v31 }
  0x13   :  { %3625 = vmatprep.subr.msk.bf16.mxu1 %vm4279_vm3, %v3623_v42  ;;  %v213_v28 = vrot.slane %v206_v27, %v4264_v21 }
  0x14   :  { %3227 = vmatmul.mubr.msk.f32.vlgmr.msra.gmra.mrb[0].mxu0 %vm108_vm0, %v107_v43 }
  0x15   :  { %3662 = vmatpush3.bf16.xpose.msk.msra.mxu0 %vm4279_vm3, %v4317_v44  ;;  %3296 = vmatprep.mubr.msk.f32.mxu0 %vm4148_vm4, %v4149_v19  ;;  %v214_v29 = vcombine.low %v213_v28, %v213_v28 }
  0x16   :  { %3663 = vmatprep.subr.bf16.mxu0 %v4147_v39 }
  0x1a   :  { %3628 = vmatpush3.bf16.xpose.msk.msra.mxu1 %vm4279_vm3, %v3623_v42 }
  0x1b   :  { %3631 = vmatprep.subr.msk.bf16.mxu1 %vm4279_vm3, %v3629_v49 }
  0x1d   :  { %3666 = vmatpush3.bf16.xpose.msk.msra.mxu0 %vm4279_vm3, %v4340_v50 }
  0x1e   :  { %3667 = vmatprep.subr.bf16.mxu0 %v4147_v39 }
  0x22   :  { %3634 = vmatpush3.bf16.xpose.msk.msra.mxu1 %vm4279_vm3, %v3629_v49 }
  0x23   :  { %3637 = vmatprep.subr.msk.bf16.mxu1 %vm4279_vm3, %v3635_v55 }
  0x25   :  { %3670 = vmatpush3.bf16.xpose.msk.msra.mxu0 %vm4279_vm3, %v4362_v56 }
  0x26   :  { %3671 = vmatprep.subr.bf16.mxu0 %v4147_v39 }
  0x2a   :  { %3640 = vmatpush3.bf16.xpose.msk.msra.mxu1 %vm4279_vm3, %v3635_v55 }
  0x2b   :  { %3643 = vmatprep.subr.msk.bf16.mxu1 %vm4279_vm3, %v3641_v61 }
  0x2d   :  { %3674 = vmatpush3.bf16.xpose.msk.msra.mxu0 %vm4279_vm3, %v4384_v62 }
  0x2e   :  { %3675 = vmatprep.subr.bf16.mxu0 %v4147_v39 }
  0x32   :  { %3646 = vmatpush3.bf16.xpose.msk.msra.mxu1 %vm4279_vm3, %v3641_v61 }
  0x33   :  { %3649 = vmatprep.subr.msk.bf16.mxu1 %vm4279_vm3, %v3647_v4 }
  0x35   :  { %3678 = vmatpush3.bf16.xpose.msk.msra.mxu0 %vm4279_vm3, %v4406_v5 }
  0x36   :  { %3679 = vmatprep.subr.bf16.mxu0 %v4147_v39 }
  0x3a   :  { %3652 = vmatpush3.bf16.xpose.msk.msra.mxu1 %vm4279_vm3, %v3647_v4 }
  0x3b   :  { %3655 = vmatprep.subr.msk.bf16.mxu1 %vm4279_vm3, %v3653_v11 }
  0x3d   :  { %3682 = vmatpush3.bf16.xpose.msk.msra.mxu0 %vm4279_vm3, %v4428_v12 }
  0x3e   :  { %3683 = vmatprep.subr.bf16.mxu0 %v4147_v39 }
  0x42   :  { %3658 = vmatpush3.bf16.xpose.msk.msra.mxu1 %vm4279_vm3, %v3653_v11 }
  0x43   :  { %3691 = vmatprep.subr.bf16.mxu1 %v4147_v39 }
  0x45   :  { %3686 = vmatpush3.bf16.xpose.msk.msra.mxu0 %vm4279_vm3, %v4444_v15 }
  0x46   :  { %3687 = vmatprep.subr.bf16.mxu0 %v4147_v39 }
  0x4d   :  { %3690 = vmatpush3.bf16.xpose.msk.msra.mxu0 %vm4279_vm3, %v4457_v18 }
  0x4e   :  { %3723 = vmatprep.subr.bf16.mxu0 %v4147_v39 }
  0x54   :  { %3297 = vmatmul.mubr.f32.vlgmr.msra.gmra.mrb[2].mxu0 %v4149_v19 }
  0x55   :  { %3726 = vmatpush3.bf16.xpose.msk.msra.mxu0 %vm4279_vm3, %v4317_v44  ;;  %3366 = vmatprep.mubr.msk.f32.mxu0 %vm4148_vm4, %v4149_v19 }
  0x56   :  { %3727 = vmatprep.subr.bf16.mxu0 %v4147_v39 }
  0x5d   :  { %3730 = vmatpush3.bf16.xpose.msk.msra.mxu0 %vm4279_vm3, %v4340_v50 }
  0x5e   :  { %3731 = vmatprep.subr.bf16.mxu0 %v4147_v39 }
  0x65   :  { %3734 = vmatpush3.bf16.xpose.msk.msra.mxu0 %vm4279_vm3, %v4362_v56 }
  0x66   :  { %3735 = vmatprep.subr.bf16.mxu0 %v4147_v39 }
  0x6d   :  { %3738 = vmatpush3.bf16.xpose.msk.msra.mxu0 %vm4279_vm3, %v4384_v62 }
  0x6e   :  { %3739 = vmatprep.subr.bf16.mxu0 %v4147_v39 }
  0x75   :  { %3742 = vmatpush3.bf16.xpose.msk.msra.mxu0 %vm4279_vm3, %v4406_v5 }
  0x76   :  { %3743 = vmatprep.subr.bf16.mxu0 %v4147_v39 }
  0x7d   :  { %3746 = vmatpush3.bf16.xpose.msk.msra.mxu0 %vm4279_vm3, %v4428_v12 }
  0x7e   :  { %3747 = vmatprep.subr.bf16.mxu0 %v4147_v39 }
  0x85   :  { %3750 = vmatpush3.bf16.xpose.msk.msra.mxu0 %vm4279_vm3, %v4444_v15 }
  0x86   :  { %3751 = vmatprep.subr.bf16.mxu0 %v4147_v39 }
  0x8d   :  { %3754 = vmatpush3.bf16.xpose.msk.msra.mxu0 %vm4279_vm3, %v4457_v18 }
  0x8e   :  { %3787 = vmatprep.subr.bf16.mxu0 %v4147_v39 }
  0xe7   :  { %v3228_v20 = vpop.f32.mrb[0].mxu0 }
  0xe8   :  { %v191_v22 = vpop.f32.mrb[1].mxu0 }
  0xe9   :  { %3261 = vmatprep.mubr.msk.f32.mxu1 %vm216_vm2, %v191_v22 }
  0xea   :  { %3262 = vmatmul.mubr.msk.f32.vlgmr.msra.gmra.mrb[0].mxu1 %vm216_vm2, %v3228_v20 }
  0xeb   :  { %3694 = vmatpush3.bf16.xpose.msk.msra.mxu1 %vm4279_vm3, %v4317_v44  ;;  %3331 = vmatprep.mubr.msk.f32.mxu1 %vm4148_vm4, %v4149_v19 }
  0xec   :  { %3695 = vmatprep.subr.bf16.mxu1 %v4147_v39 }
  0xf3   :  { %3698 = vmatpush3.bf16.xpose.msk.msra.mxu1 %vm4279_vm3, %v4340_v50 }
  0xf4   :  { %3699 = vmatprep.subr.bf16.mxu1 %v4147_v39 }
  0xfb   :  { %3702 = vmatpush3.bf16.xpose.msk.msra.mxu1 %vm4279_vm3, %v4362_v56 }
  0xfc   :  { %3703 = vmatprep.subr.bf16.mxu1 %v4147_v39 }
 0x103   :  { %3706 = vmatpush3.bf16.xpose.msk.msra.mxu1 %vm4279_vm3, %v4384_v62 }
 0x104   :  { %3707 = vmatprep.subr.bf16.mxu1 %v4147_v39 }
 0x10b   :  { %3710 = vmatpush3.bf16.xpose.msk.msra.mxu1 %vm4279_vm3, %v4406_v5 }
 0x10c   :  { %3711 = vmatprep.subr.bf16.mxu1 %v4147_v39 }
 0x113   :  { %3714 = vmatpush3.bf16.xpose.msk.msra.mxu1 %vm4279_vm3, %v4428_v12 }
 0x114   :  { %3715 = vmatprep.subr.bf16.mxu1 %v4147_v39 }
 0x11b   :  { %3718 = vmatpush3.bf16.xpose.msk.msra.mxu1 %vm4279_vm3, %v4444_v15 }
 0x11c   :  { %3719 = vmatprep.subr.bf16.mxu1 %v4147_v39 }
 0x123   :  { %3722 = vmatpush3.bf16.xpose.msk.msra.mxu1 %vm4279_vm3, %v4457_v18 }
 0x124   :  { %3755 = vmatprep.subr.bf16.mxu1 %v4147_v39 }
 0x127   :  { %v537_v23 = vpop.f32.mrb[2].mxu0 }
 0x128   :  { %v3298_v24 = vpop.f32.mrb[3].mxu0 }
 0x1bd   :  { %v3263_v30 = vpop.f32.mrb[0].mxu1 }
 0x1be   :  { %v343_v31 = vadd.f32 %v3263_v30, %v214_v29  ;;  %v337_v32 = vpop.f32.mrb[1].mxu1 }
 0x1bf   :  { %v338_v33 = vadd.f32 %v337_v32, %v214_v29 }
 0x1c0   :  { %v365_v34 = vcombine.high %v343_v31, %v343_v31  ;;  %v372_v35 = vrot.slane %v343_v31, %v4264_v21  ;;  %2858 = vst.sshfl [vmem:[#allocation2 + $0x8] sm:$0x3 pattern:$0x76325410] %v343_v31 }
 0x1c1   :  { %v348_v36 = vcombine.high %v338_v33, %v338_v33  ;;  %v355_v37 = vrot.slane %v338_v33, %v4264_v21  ;;  %2856 = vst.sshfl [vmem:[#allocation2] sm:$0x3 pattern:$0x76325410] %v338_v33 }
 0x1c2   :  { %v379_v38 = vrot.slane %v365_v34, %v4264_v21  ;;  %v380_v40 = vcombine.high %v372_v35, %v372_v35  ;;  %2859 = vst.sshfl [vmem:[#allocation2 + $0xc] sm:$0x3 pattern:$0x76325410] %v365_v34 }
 0x1c3   :  { %v362_v41 = vrot.slane %v348_v36, %v4264_v21  ;;  %v363_v42 = vcombine.high %v355_v37, %v355_v37  ;;  %2857 = vst.sshfl [vmem:[#allocation2 + $0x4] sm:$0x3 pattern:$0x76325410] %v348_v36 }
 0x1c4   :  { %v381_v43 = vcombine.high %v379_v38, %v379_v38  ;;  %395 = vst [vmem:[#allocation2 + $0xa] sm:$0x3] %v380_v40 }
 0x1c5   :  { %v364_v45 = vcombine.high %v362_v41, %v362_v41  ;;  %391 = vst [vmem:[#allocation2 + $0x2] sm:$0x3] %v363_v42 }
 0x1c6   :  { %397 = vst [vmem:[#allocation2 + $0xe] sm:$0x3] %v381_v43 }
 0x1c7   :  { %393 = vst [vmem:[#allocation2 + $0x6] sm:$0x3] %v364_v45 }
 0x1c8   :  { %v419_v46 = vld [vmem:[#allocation2] sm:$0x3] }
 0x1c9   :  { %v541_v47 = vadd.f32 %v537_v23, %v419_v46 }
 0x1ca   :  { %v680_v31 = vld [vmem:[#allocation2 + $0x4] sm:$0x3] }
 0x1cb   :  { %v2876_v48 = vmul.f32 -1.442695, %v541_v47 }
 0x1cc   :  { %v574_v4 = vld [vmem:[#allocation2 + $0x2] sm:$0x3] }
 0x1cd   :  { %3972 = vpow2.f32 %v2876_v48 }
 0x1ce   :  { %3974 = vtanh.f32 %v541_v47 }
 0x1d7   :  { %v3973_v49 = vpop.eup %3972 }
 0x1d8   :  { %v546_v51 = vadd.f32 1.0, %v3973_v49  ;;  %v3975_v54 = vpop.eup %3974 }
 0x1da   :  { %3976 = vrcp.f32 %v546_v51 }
 0x1e4   :  { %v3977_v55 = vpop.eup %3976 }
 0x1e5   :  { %v549_v57 = vsel %vm4545_vm7, %v3975_v54, %v3977_v55  ;;  %v786_v54 = vld [vmem:[#allocation2 + $0x6] sm:$0x3] }
 0x1e6   :  { %552 = vrot.lane.b32.xlu0 %v549_v57, %s4150_s4  ;;  %v550_v0 = vmul.f32 0.0, %v549_v57 }
 0x258   :  { %v553_v58 = vpop.permute.xlu0 %552 }
 0x259   :  { %v555_v59 = vmul.f32 %v553_v58, %v549_v57 }
 0x25b   :  { %557 = vrot.lane.b32.xlu0 %v555_v59, %s4151_s22 }
 0x2cd   :  { %v558_v60 = vpop.permute.xlu0 %557 }
 0x2ce   :  { %v560_v61 = vadd.f32 %v558_v60, %v550_v0 }
 0x2d0   :  { %3978 = vtanh.f32 %v560_v61 }
 0x2da   :  { %v3979_v63 = vpop.eup %3978 }
 0x2db   :  { %563 = vrot.lane.b32.xlu1 %v3979_v63, %s4150_s4 }
 0x34d   :  { %v564_v1 = vpop.permute.xlu1 %563 }
 0x34e   :  { %v566_v2 = vmul.f32 %v564_v1, %v549_v57 }
 0x350   :  { %568 = vrot.lane.b32.xlu1 %v566_v2, %s4151_s22 }
 0x3c2   :  { %v569_v3 = vpop.permute.xlu1 %568 }
 0x3c3   :  { %572 = vst.msk [vmem:[#allocation3] sm:$0x3] %vm571_vm8, %v569_v3  ;;  %3332 = vmatmul.mubr.msk.f32.vlgmr.msra.gmra.mrb[2].mxu1 %vm216_vm2, %v569_v3 }
 0x3c4   :  { %3758 = vmatpush3.bf16.xpose.msk.msra.mxu1 %vm4279_vm3, %v4317_v44  ;;  %3401 = vmatprep.mubr.msk.f32.mxu1 %vm4148_vm4, %v4149_v19 }
 0x3c5   :  { %3759 = vmatprep.subr.bf16.mxu1 %v4147_v39 }
 0x3cc   :  { %3762 = vmatpush3.bf16.xpose.msk.msra.mxu1 %vm4279_vm3, %v4340_v50 }
 0x3cd   :  { %3763 = vmatprep.subr.bf16.mxu1 %v4147_v39 }
 0x3d4   :  { %3766 = vmatpush3.bf16.xpose.msk.msra.mxu1 %vm4279_vm3, %v4362_v56 }
 0x3d5   :  { %3767 = vmatprep.subr.bf16.mxu1 %v4147_v39 }
 0x3dc   :  { %3770 = vmatpush3.bf16.xpose.msk.msra.mxu1 %vm4279_vm3, %v4384_v62 }
 0x3dd   :  { %3771 = vmatprep.subr.bf16.mxu1 %v4147_v39 }
 0x3e4   :  { %3774 = vmatpush3.bf16.xpose.msk.msra.mxu1 %vm4279_vm3, %v4406_v5 }
 0x3e5   :  { %3775 = vmatprep.subr.bf16.mxu1 %v4147_v39 }
 0x3ec   :  { %3778 = vmatpush3.bf16.xpose.msk.msra.mxu1 %vm4279_vm3, %v4428_v12 }
 0x3ed   :  { %3779 = vmatprep.subr.bf16.mxu1 %v4147_v39 }
 0x3f4   :  { %3782 = vmatpush3.bf16.xpose.msk.msra.mxu1 %vm4279_vm3, %v4444_v15 }
 0x3f5   :  { %3783 = vmatprep.subr.bf16.mxu1 %v4147_v39 }
 0x3fc   :  { %3786 = vmatpush3.bf16.xpose.msk.msra.mxu1 %vm4279_vm3, %v4457_v18 }
 0x3fd   :  { %3819 = vmatprep.subr.bf16.mxu1 %v4147_v39 }
 0x496   :  { %v643_v6 = vpop.f32.mrb[2].mxu1 }
 0x497   :  { %v647_v7 = vadd.f32 %v643_v6, %v574_v4  ;;  %v3333_v8 = vpop.f32.mrb[3].mxu1 }
 0x499   :  { %v2894_v9 = vmul.f32 -1.442695, %v647_v7 }
 0x49b   :  { %3980 = vpow2.f32 %v2894_v9 }
 0x49c   :  { %3982 = vtanh.f32 %v647_v7 }
 0x4a5   :  { %v3981_v11 = vpop.eup %3980 }
 0x4a6   :  { %v652_v13 = vadd.f32 1.0, %v3981_v11  ;;  %v3983_v14 = vpop.eup %3982 }
 0x4a8   :  { %3984 = vrcp.f32 %v652_v13 }
 0x4b2   :  { %v3985_v16 = vpop.eup %3984 }
 0x4b3   :  { %v655_v17 = vsel %vm4545_vm7, %v3983_v14, %v3985_v16  ;;  %v892_v14 = vld [vmem:[#allocation2 + $0x8] sm:$0x3] }
 0x4b4   :  { %658 = vrot.lane.b32.xlu0 %v655_v17, %s4150_s4  ;;  %v656_v23 = vmul.f32 %v655_v17, %v560_v61 }
 0x526   :  { %v659_v20 = vpop.permute.xlu0 %658 }
 0x527   :  { %v661_v22 = vmul.f32 %v659_v20, %v655_v17 }
 0x529   :  { %663 = vrot.lane.b32.xlu1 %v661_v22, %s4151_s22 }
 0x59b   :  { %v664_v24 = vpop.permute.xlu1 %663 }
 0x59c   :  { %v666_v25 = vadd.f32 %v664_v24, %v656_v23 }
 0x59e   :  { %3986 = vtanh.f32 %v666_v25 }
 0x5a8   :  { %v3987_v27 = vpop.eup %3986 }
 0x5a9   :  { %669 = vrot.lane.b32.xlu0 %v3987_v27, %s4150_s4 }
 0x61b   :  { %v670_v28 = vpop.permute.xlu0 %669 }
 0x61c   :  { %v672_v29 = vmul.f32 %v670_v28, %v655_v17 }
 0x61e   :  { %674 = vrot.lane.b32.xlu1 %v672_v29, %s4151_s22 }
 0x690   :  { %v675_v30 = vpop.permute.xlu1 %674 }
 0x691   :  { %678 = vst.msk [vmem:[#allocation3 + $0x2] sm:$0x3] %vm571_vm8, %v675_v30  ;;  %3367 = vmatmul.mubr.msk.f32.vlgmr.msra.gmra.mrb[4].mxu0 %vm216_vm2, %v675_v30 }
 0x692   :  { %3790 = vmatpush3.bf16.xpose.msk.msra.mxu0 %vm4279_vm3, %v4317_v44  ;;  %3436 = vmatprep.mubr.msk.f32.mxu0 %vm4148_vm4, %v4149_v19 }
 0x693   :  { %3791 = vmatprep.subr.bf16.mxu0 %v4147_v39 }
 0x69a   :  { %3794 = vmatpush3.bf16.xpose.msk.msra.mxu0 %vm4279_vm3, %v4340_v50 }
 0x69b   :  { %3795 = vmatprep.subr.bf16.mxu0 %v4147_v39 }
 0x6a2   :  { %3798 = vmatpush3.bf16.xpose.msk.msra.mxu0 %vm4279_vm3, %v4362_v56 }
 0x6a3   :  { %3799 = vmatprep.subr.bf16.mxu0 %v4147_v39 }
 0x6aa   :  { %3802 = vmatpush3.bf16.xpose.msk.msra.mxu0 %vm4279_vm3, %v4384_v62 }
 0x6ab   :  { %3803 = vmatprep.subr.bf16.mxu0 %v4147_v39 }
 0x6b2   :  { %3806 = vmatpush3.bf16.xpose.msk.msra.mxu0 %vm4279_vm3, %v4406_v5 }
 0x6b3   :  { %3807 = vmatprep.subr.bf16.mxu0 %v4147_v39 }
 0x6ba   :  { %3810 = vmatpush3.bf16.xpose.msk.msra.mxu0 %vm4279_vm3, %v4428_v12 }
 0x6bb   :  { %3811 = vmatprep.subr.bf16.mxu0 %v4147_v39 }
 0x6c2   :  { %3814 = vmatpush3.bf16.xpose.msk.msra.mxu0 %vm4279_vm3, %v4444_v15 }
 0x6c3   :  { %3815 = vmatprep.subr.bf16.mxu0 %v4147_v39 }
 0x6ca   :  { %3818 = vmatpush3.bf16.xpose.msk.msra.mxu0 %vm4279_vm3, %v4457_v18 }
 0x6cb   :  { %3851 = vmatprep.subr.bf16.mxu0 %v4147_v39 }
 0x764   :  { %v749_v32 = vpop.f32.mrb[4].mxu0 }
 0x765   :  { %v753_v33 = vadd.f32 %v749_v32, %v680_v31  ;;  %v3368_v34 = vpop.f32.mrb[5].mxu0 }
 0x767   :  { %v2912_v35 = vmul.f32 -1.442695, %v753_v33 }
 0x769   :  { %3988 = vpow2.f32 %v2912_v35 }
 0x76a   :  { %3990 = vtanh.f32 %v753_v33 }
 0x773   :  { %v3989_v36 = vpop.eup %3988 }
 0x774   :  { %v758_v37 = vadd.f32 1.0, %v3989_v36  ;;  %v3991_v38 = vpop.eup %3990 }
 0x776   :  { %3992 = vrcp.f32 %v758_v37 }
 0x780   :  { %v3993_v40 = vpop.eup %3992 }
 0x781   :  { %v761_v41 = vsel %vm4545_vm7, %v3991_v38, %v3993_v40 }
 0x782   :  { %764 = vrot.lane.b32.xlu0 %v761_v41, %s4150_s4  ;;  %v762_v45 = vmul.f32 %v761_v41, %v666_v25 }
 0x7f4   :  { %v765_v42 = vpop.permute.xlu0 %764 }
 0x7f5   :  { %v767_v43 = vmul.f32 %v765_v42, %v761_v41 }
 0x7f7   :  { %769 = vrot.lane.b32.xlu1 %v767_v43, %s4151_s22 }
 0x869   :  { %v770_v46 = vpop.permute.xlu1 %769 }
 0x86a   :  { %v772_v47 = vadd.f32 %v770_v46, %v762_v45 }
 0x86c   :  { %3994 = vtanh.f32 %v772_v47 }
 0x876   :  { %v3995_v48 = vpop.eup %3994 }
 0x877   :  { %775 = vrot.lane.b32.xlu0 %v3995_v48, %s4150_s4 }
 0x8e9   :  { %v776_v49 = vpop.permute.xlu0 %775 }
 0x8ea   :  { %v778_v51 = vmul.f32 %v776_v49, %v761_v41 }
 0x8ec   :  { %780 = vrot.lane.b32.xlu1 %v778_v51, %s4151_s22 }
 0x95e   :  { %v781_v52 = vpop.permute.xlu1 %780 }
 0x95f   :  { %784 = vst.msk [vmem:[#allocation3 + $0x4] sm:$0x3] %vm571_vm8, %v781_v52  ;;  %3402 = vmatmul.mubr.msk.f32.vlgmr.msra.gmra.mrb[4].mxu1 %vm216_vm2, %v781_v52  ;;  %v4766_v52 = vld [vmem:[#allocation3 + $0x2] sm:$0x3] }
 0x960   :  { %3822 = vmatpush3.bf16.xpose.msk.msra.mxu1 %vm4279_vm3, %v4317_v44  ;;  %3471 = vmatprep.mubr.msk.f32.mxu1 %vm4148_vm4, %v4149_v19 }
 0x961   :  { %3823 = vmatprep.subr.bf16.mxu1 %v4147_v39 }
 0x968   :  { %3826 = vmatpush3.bf16.xpose.msk.msra.mxu1 %vm4279_vm3, %v4340_v50 }
 0x969   :  { %3827 = vmatprep.subr.bf16.mxu1 %v4147_v39 }
 0x970   :  { %3830 = vmatpush3.bf16.xpose.msk.msra.mxu1 %vm4279_vm3, %v4362_v56 }
 0x971   :  { %3831 = vmatprep.subr.bf16.mxu1 %v4147_v39 }
 0x978   :  { %3834 = vmatpush3.bf16.xpose.msk.msra.mxu1 %vm4279_vm3, %v4384_v62 }
 0x979   :  { %3835 = vmatprep.subr.bf16.mxu1 %v4147_v39 }
 0x980   :  { %3838 = vmatpush3.bf16.xpose.msk.msra.mxu1 %vm4279_vm3, %v4406_v5 }
 0x981   :  { %3839 = vmatprep.subr.bf16.mxu1 %v4147_v39 }
 0x988   :  { %3842 = vmatpush3.bf16.xpose.msk.msra.mxu1 %vm4279_vm3, %v4428_v12 }
 0x989   :  { %3843 = vmatprep.subr.bf16.mxu1 %v4147_v39 }
 0x990   :  { %3846 = vmatpush3.bf16.xpose.msk.msra.mxu1 %vm4279_vm3, %v4444_v15 }
 0x991   :  { %3847 = vmatprep.subr.bf16.mxu1 %v4147_v39 }
 0x998   :  { %3850 = vmatpush3.bf16.xpose.msk.msra.mxu1 %vm4279_vm3, %v4457_v18 }
 0x999   :  { %3883 = vmatprep.subr.bf16.mxu1 %v4147_v39 }
 0xa32   :  { %v855_v55 = vpop.f32.mrb[4].mxu1 }
 0xa33   :  { %v859_v57 = vadd.f32 %v855_v55, %v786_v54  ;;  %v3403_v58 = vpop.f32.mrb[5].mxu1  ;;  %v4768_v54 = vld [vmem:[#allocation3 + $0x4] sm:$0x3] }
 0xa35   :  { %v2930_v59 = vmul.f32 -1.442695, %v859_v57 }
 0xa37   :  { %3996 = vpow2.f32 %v2930_v59 }
 0xa38   :  { %3998 = vtanh.f32 %v859_v57  ;;  %v4772_v57 = vld [vmem:[#allocation3] sm:$0x3] }
 0xa39   :  { %v1341_v58 = vcombine.low %v4772_v57, %v4766_v52 }
 0xa41   :  { %v3997_v0 = vpop.eup %3996 }
 0xa42   :  { %v864_v60 = vadd.f32 1.0, %v3997_v0  ;;  %v3999_v61 = vpop.eup %3998  ;;  %v1349_v0 = vrot.slane %v1341_v58, %v4264_v21  ;;  %v1521_v58 = vld [vmem:[%s5152_s6] sm:$0xff] }
 0xa44   :  { %4000 = vrcp.f32 %v864_v60 }
 0xa4e   :  { %v4001_v63 = vpop.eup %4000 }
 0xa4f   :  { %v867_v1 = vsel %vm4545_vm7, %v3999_v61, %v4001_v63  ;;  %v1104_v63 = vld [vmem:[#allocation2 + $0xc] sm:$0x3] }
 0xa50   :  { %870 = vrot.lane.b32.xlu0 %v867_v1, %s4150_s4  ;;  %v868_v4 = vmul.f32 %v867_v1, %v772_v47 }
 0xac2   :  { %v871_v2 = vpop.permute.xlu0 %870 }
 0xac3   :  { %v873_v3 = vmul.f32 %v871_v2, %v867_v1 }
 0xac5   :  { %875 = vrot.lane.b32.xlu1 %v873_v3, %s4151_s22 }
 0xb37   :  { %v876_v6 = vpop.permute.xlu1 %875 }
 0xb38   :  { %v878_v7 = vadd.f32 %v876_v6, %v868_v4 }
 0xb3a   :  { %4002 = vtanh.f32 %v878_v7 }
 0xb44   :  { %v4003_v8 = vpop.eup %4002 }
 0xb45   :  { %881 = vrot.lane.b32.xlu0 %v4003_v8, %s4150_s4 }
 0xbb7   :  { %v882_v9 = vpop.permute.xlu0 %881 }
 0xbb8   :  { %v884_v11 = vmul.f32 %v882_v9, %v867_v1 }
 0xbba   :  { %886 = vrot.lane.b32.xlu1 %v884_v11, %s4151_s22 }
 0xc2c   :  { %v887_v13 = vpop.permute.xlu1 %886 }
 0xc2d   :  { %890 = vst.msk [vmem:[#allocation3 + $0x6] sm:$0x3] %vm571_vm8, %v887_v13  ;;  %3437 = vmatmul.mubr.msk.f32.vlgmr.msra.gmra.mrb[6].mxu0 %vm216_vm2, %v887_v13 }
 0xc2e   :  { %3854 = vmatpush3.bf16.xpose.msk.msra.mxu0 %vm4279_vm3, %v4317_v44  ;;  %3506 = vmatprep.mubr.msk.f32.mxu0 %vm4148_vm4, %v4149_v19 }
 0xc2f   :  { %3855 = vmatprep.subr.bf16.mxu0 %v4147_v39 }
 0xc34   :  { %v4764_v51 = vld [vmem:[#allocation3 + $0x6] sm:$0x3] }
 0xc35   :  { %v1342_v55 = vcombine.low %v4768_v54, %v4764_v51 }
 0xc36   :  { %3858 = vmatpush3.bf16.xpose.msk.msra.mxu0 %vm4279_vm3, %v4340_v50 }
 0xc37   :  { %3859 = vmatprep.subr.bf16.mxu0 %v4147_v39  ;;  %v1356_v59 = vrot.slane %v1342_v55, %v4264_v21 }
 0xc39   :  { %v1357_v61 = vcombine.low %v1349_v0, %v1356_v59  ;;  %v1522_v59 = vld [vmem:[%s5152_s6 + $0x8] sm:$0xff] }
 0xc3e   :  { %3862 = vmatpush3.bf16.xpose.msk.msra.mxu0 %vm4279_vm3, %v4362_v56 }
 0xc3f   :  { %3863 = vmatprep.subr.bf16.mxu0 %v4147_v39 }
 0xc46   :  { %3866 = vmatpush3.bf16.xpose.msk.msra.mxu0 %vm4279_vm3, %v4384_v62 }
 0xc47   :  { %3867 = vmatprep.subr.bf16.mxu0 %v4147_v39 }
 0xc4e   :  { %3870 = vmatpush3.bf16.xpose.msk.msra.mxu0 %vm4279_vm3, %v4406_v5 }
 0xc4f   :  { %3871 = vmatprep.subr.bf16.mxu0 %v4147_v39 }
 0xc56   :  { %3874 = vmatpush3.bf16.xpose.msk.msra.mxu0 %vm4279_vm3, %v4428_v12 }
 0xc57   :  { %3875 = vmatprep.subr.bf16.mxu0 %v4147_v39 }
 0xc5e   :  { %3878 = vmatpush3.bf16.xpose.msk.msra.mxu0 %vm4279_vm3, %v4444_v15 }
 0xc5f   :  { %3879 = vmatprep.subr.bf16.mxu0 %v4147_v39 }
 0xc66   :  { %3882 = vmatpush3.bf16.xpose.msk.msra.mxu0 %vm4279_vm3, %v4457_v18 }
 0xd00   :  { %v961_v16 = vpop.f32.mrb[6].mxu0 }
 0xd01   :  { %v965_v17 = vadd.f32 %v961_v16, %v892_v14  ;;  %v3438_v20 = vpop.f32.mrb[7].mxu0 }
 0xd03   :  { %v2948_v22 = vmul.f32 -1.442695, %v965_v17 }
 0xd05   :  { %4004 = vpow2.f32 %v2948_v22 }
 0xd06   :  { %4006 = vtanh.f32 %v965_v17 }
 0xd0f   :  { %v4005_v23 = vpop.eup %4004 }
 0xd10   :  { %v970_v24 = vadd.f32 1.0, %v4005_v23  ;;  %v4007_v25 = vpop.eup %4006 }
 0xd12   :  { %4008 = vrcp.f32 %v970_v24 }
 0xd1c   :  { %v4009_v27 = vpop.eup %4008 }
 0xd1d   :  { %v973_v28 = vsel %vm4545_vm7, %v4007_v25, %v4009_v27  ;;  %v1210_v27 = vld [vmem:[#allocation2 + $0xe] sm:$0x3] }
 0xd1e   :  { %976 = vrot.lane.b32.xlu0 %v973_v28, %s4150_s4  ;;  %v974_v31 = vmul.f32 %v973_v28, %v878_v7 }
 0xd90   :  { %v977_v29 = vpop.permute.xlu0 %976 }
 0xd91   :  { %v979_v30 = vmul.f32 %v977_v29, %v973_v28 }
 0xd93   :  { %981 = vrot.lane.b32.xlu1 %v979_v30, %s4151_s22 }
 0xe05   :  { %v982_v32 = vpop.permute.xlu1 %981 }
 0xe06   :  { %v984_v33 = vadd.f32 %v982_v32, %v974_v31 }
 0xe08   :  { %4010 = vtanh.f32 %v984_v33 }
 0xe12   :  { %v4011_v34 = vpop.eup %4010 }
 0xe13   :  { %987 = vrot.lane.b32.xlu0 %v4011_v34, %s4150_s4 }
 0xe85   :  { %v988_v35 = vpop.permute.xlu0 %987 }
 0xe86   :  { %v990_v36 = vmul.f32 %v988_v35, %v973_v28 }
 0xe88   :  { %992 = vrot.lane.b32.xlu1 %v990_v36, %s4151_s22 }
 0xefa   :  { %v993_v37 = vpop.permute.xlu1 %992 }
 0xefb   :  { %996 = vst.msk [vmem:[#allocation3 + $0x8] sm:$0x3] %vm571_vm8, %v993_v37  ;;  %3472 = vmatmul.mubr.msk.f32.vlgmr.msra.gmra.mrb[6].mxu1 %vm216_vm2, %v993_v37 }
 0xefc   :  { %3886 = vmatpush3.bf16.xpose.msk.msra.mxu1 %vm4279_vm3, %v4317_v44  ;;  %3541 = vmatprep.mubr.msk.f32.mxu1 %vm4148_vm4, %v4149_v19  ;;  %v998_v44 = vld [vmem:[#allocation2 + $0xa] sm:$0x3] }
 0xefd   :  { %3887 = vmatprep.subr.bf16.mxu1 %v4147_v39 }
 0xf04   :  { %3890 = vmatpush3.bf16.xpose.msk.msra.mxu1 %vm4279_vm3, %v4340_v50 }
 0xf05   :  { %3891 = vmatprep.subr.bf16.mxu1 %v4147_v39 }
 0xf0c   :  { %3894 = vmatpush3.bf16.xpose.msk.msra.mxu1 %vm4279_vm3, %v4362_v56 }
 0xf0d   :  { %3895 = vmatprep.subr.bf16.mxu1 %v4147_v39 }
 0xf14   :  { %3898 = vmatpush3.bf16.xpose.msk.msra.mxu1 %vm4279_vm3, %v4384_v62 }
 0xf15   :  { %3899 = vmatprep.subr.bf16.mxu1 %v4147_v39 }
 0xf1c   :  { %3902 = vmatpush3.bf16.xpose.msk.msra.mxu1 %vm4279_vm3, %v4406_v5 }
 0xf1d   :  { %3903 = vmatprep.subr.bf16.mxu1 %v4147_v39 }
 0xf24   :  { %3906 = vmatpush3.bf16.xpose.msk.msra.mxu1 %vm4279_vm3, %v4428_v12 }
 0xf25   :  { %3907 = vmatprep.subr.bf16.mxu1 %v4147_v39 }
 0xf2c   :  { %3910 = vmatpush3.bf16.xpose.msk.msra.mxu1 %vm4279_vm3, %v4444_v15 }
 0xf2d   :  { %3911 = vmatprep.subr.bf16.mxu1 %v4147_v39 }
 0xf34   :  { %3914 = vmatpush3.bf16.xpose.msk.msra.mxu1 %vm4279_vm3, %v4457_v18 }
 0xf35   :  { %3951 = vmatprep.subr.bf16.mxu1 %v4147_v39 }
 0xfce   :  { %v1067_v50 = vpop.f32.mrb[6].mxu1 }
 0xfcf   :  { %v1071_v56 = vadd.f32 %v1067_v50, %v998_v44  ;;  %v3473_v62 = vpop.f32.mrb[7].mxu1 }
 0xfd1   :  { %v2966_v5 = vmul.f32 -1.442695, %v1071_v56 }
 0xfd3   :  { %4012 = vpow2.f32 %v2966_v5  ;;  %v1323_v5 = vld [vmem:[%s5151_s7] sm:$0xff] }
 0xfd4   :  { %4014 = vtanh.f32 %v1071_v56 }
 0xfdd   :  { %v4013_v12 = vpop.eup %4012 }
 0xfde   :  { %v1076_v38 = vadd.f32 1.0, %v4013_v12  ;;  %v4015_v40 = vpop.eup %4014  ;;  %v1324_v12 = vld [vmem:[%s5151_s7 + $0x8] sm:$0xff] }
 0xfdf   :  { %v3915_v53 = vpack.c.bf16 %v1324_v12, %v1323_v5 }
 0xfe0   :  { %4016 = vrcp.f32 %v1076_v38 }
 0xfe1   :  { %3917 = vmatprep.subr.msk.bf16.mxu0 %vm4279_vm3, %v3915_v53 }
 0xfea   :  { %v4017_v15 = vpop.eup %4016 }
 0xfeb   :  { %v1079_v41 = vsel %vm4545_vm7, %v4015_v40, %v4017_v15  ;;  %v1325_v40 = vld [vmem:[%s5151_s7 + $0x10] sm:$0xff]  ;;  %v1326_v15 = vld [vmem:[%s5151_s7 + $0x18] sm:$0xff] }
 0xfec   :  { %1082 = vrot.lane.b32.xlu0 %v1079_v41, %s4150_s4  ;;  %v1080_v43 = vmul.f32 %v1079_v41, %v984_v33 }
0x105e   :  { %v1083_v18 = vpop.permute.xlu0 %1082 }
0x105f   :  { %v1085_v42 = vmul.f32 %v1083_v18, %v1079_v41 }
0x1061   :  { %1087 = vrot.lane.b32.xlu1 %v1085_v42, %s4151_s22 }
0x10d3   :  { %v1088_v45 = vpop.permute.xlu1 %1087 }
0x10d4   :  { %v1090_v46 = vadd.f32 %v1088_v45, %v1080_v43 }
0x10d6   :  { %4018 = vtanh.f32 %v1090_v46 }
0x10e0   :  { %v4019_v47 = vpop.eup %4018 }
0x10e1   :  { %1093 = vrot.lane.b32.xlu0 %v4019_v47, %s4150_s4 }
0x1153   :  { %v1094_v48 = vpop.permute.xlu0 %1093 }
0x1154   :  { %v1096_v49 = vmul.f32 %v1094_v48, %v1079_v41  ;;  %v3921_v41 = vpack.c.bf16 %v1326_v15, %v1325_v40 }
0x1156   :  { %1098 = vrot.lane.b32.xlu1 %v1096_v49, %s4151_s22 }
0x11c8   :  { %v1099_v60 = vpop.permute.xlu1 %1098 }
0x11c9   :  { %1102 = vst.msk [vmem:[#allocation3 + $0xa] sm:$0x3] %vm571_vm8, %v1099_v60  ;;  %3507 = vmatmul.mubr.msk.f32.vlgmr.msra.gmra.mrb[8].mxu0 %vm216_vm2, %v1099_v60 }
0x11ca   :  { %3552 = vmatprep.mubr.msk.f32.mxu0 %vm216_vm2, %v1357_v61  ;;  %3920 = vmatpush3.bf16.xpose.msk.msra.mxu0 %vm4279_vm3, %v3915_v53  ;;  %v4839_v61 = vpack.c.bf16 %v1522_v59, %v1521_v58 }
0x11cb   :  { %3923 = vmatprep.subr.msk.bf16.mxu0 %vm4279_vm3, %v3921_v41 }
0x11d0   :  { %v4819_v45 = vld [vmem:[#allocation3 + $0xa] sm:$0x3] }
0x11d2   :  { %3926 = vmatpush3.bf16.xpose.msk.msra.mxu0 %vm4279_vm3, %v3921_v41 }
0x11d3   :  { %3927 = vmatprep.subr.bf16.mxu0 %v4147_v39 }
0x129c   :  { %v1173_v1 = vpop.f32.mrb[8].mxu0 }
0x129d   :  { %v1177_v2 = vadd.f32 %v1173_v1, %v1104_v63  ;;  %v3508_v3 = vpop.f32.mrb[9].mxu0  ;;  %v1523_v1 = vld [vmem:[%s5152_s6 + $0x10] sm:$0xff] }
0x129f   :  { %v2984_v4 = vmul.f32 -1.442695, %v1177_v2 }
0x12a1   :  { %4020 = vpow2.f32 %v2984_v4  ;;  %v3003_v4 = vld [vmem:[%s5153_s8] ss:$0 sm:$0xff] }
0x12a2   :  { %4022 = vtanh.f32 %v1177_v2  ;;  %v1524_v2 = vld [vmem:[%s5152_s6 + $0x18] sm:$0xff] }
0x12a3   :  { %v4854_v3 = vpack.c.bf16 %v1524_v2, %v1523_v1 }
0x12ab   :  { %v4021_v6 = vpop.eup %4020 }
0x12ac   :  { %v1182_v7 = vadd.f32 1.0, %v4021_v6  ;;  %v4023_v8 = vpop.eup %4022  ;;  %v1375_v6 = vcombine.low %v3003_v4, %v3003_v4 }
0x12ae   :  { %4024 = vrcp.f32 %v1182_v7  ;;  %v1382_v7 = vrot.slane %v1375_v6, %v4264_v21 }
0x12b8   :  { %v4025_v9 = vpop.eup %4024 }
0x12b9   :  { %v1185_v11 = vsel %vm4545_vm7, %v4023_v8, %v4025_v9  ;;  %v1383_v9 = vcombine.low %v1382_v7, %v1382_v7 }
0x12ba   :  { %1188 = vrot.lane.b32.xlu0 %v1185_v11, %s4150_s4  ;;  %v1186_v16 = vmul.f32 %v1185_v11, %v1090_v46  ;;  %v4821_v46 = vld [vmem:[#allocation3 + $0x8] sm:$0x3] }
0x12bb   :  { %v1358_v47 = vcombine.low %v4821_v46, %v4819_v45 }
0x12bd   :  { %v1366_v0 = vrot.slane %v1358_v47, %v4264_v21 }
0x132c   :  { %v1189_v13 = vpop.permute.xlu0 %1188 }
0x132d   :  { %v1191_v14 = vmul.f32 %v1189_v13, %v1185_v11 }
0x132f   :  { %1193 = vrot.lane.b32.xlu1 %v1191_v14, %s4151_s22 }
0x13a1   :  { %v1194_v17 = vpop.permute.xlu1 %1193 }
0x13a2   :  { %v1196_v20 = vadd.f32 %v1194_v17, %v1186_v16 }
0x13a4   :  { %4026 = vtanh.f32 %v1196_v20 }
0x13ae   :  { %v4027_v22 = vpop.eup %4026 }
0x13af   :  { %1199 = vrot.lane.b32.xlu0 %v4027_v22, %s4150_s4 }
0x1421   :  { %v1200_v23 = vpop.permute.xlu0 %1199 }
0x1422   :  { %v1202_v24 = vmul.f32 %v1200_v23, %v1185_v11 }
0x1424   :  { %1204 = vrot.lane.b32.xlu1 %v1202_v24, %s4151_s22 }
0x1496   :  { %v1205_v25 = vpop.permute.xlu1 %1204 }
0x1497   :  { %1208 = vst.msk [vmem:[#allocation3 + $0xc] sm:$0x3] %vm571_vm8, %v1205_v25  ;;  %3542 = vmatmul.mubr.msk.f32.vlgmr.msra.gmra.mrb[8].mxu1 %vm216_vm2, %v1205_v25 }
0x1498   :  { %3596 = vmatprep.mubr.msk.f32.mxu1 %vm4148_vm4, %v4149_v19 }
0x149e   :  { %v4825_v48 = vld [vmem:[#allocation3 + $0xc] sm:$0x3] }
0x156a   :  { %v1279_v28 = vpop.f32.mrb[8].mxu1 }
0x156b   :  { %v1283_v29 = vadd.f32 %v1279_v28, %v1210_v27  ;;  %v3543_v30 = vpop.f32.mrb[9].mxu1 }
0x156d   :  { %v3002_v31 = vmul.f32 -1.442695, %v1283_v29 }
0x156f   :  { %4028 = vpow2.f32 %v3002_v31 }
0x1570   :  { %4030 = vtanh.f32 %v1283_v29 }
0x1579   :  { %v4029_v32 = vpop.eup %4028 }
0x157a   :  { %v1288_v33 = vadd.f32 1.0, %v4029_v32  ;;  %v4031_v34 = vpop.eup %4030 }
0x157c   :  { %4032 = vrcp.f32 %v1288_v33 }
0x1586   :  { %v4033_v35 = vpop.eup %4032 }
0x1587   :  { %v1291_v36 = vsel %vm4545_vm7, %v4031_v34, %v4033_v35 }
0x1588   :  { %1294 = vrot.lane.b32.xlu0 %v1291_v36, %s4150_s4  ;;  %v1292_v50 = vmul.f32 %v1291_v36, %v1196_v20 }
0x15fa   :  { %v1295_v37 = vpop.permute.xlu0 %1294 }
0x15fb   :  { %v1297_v44 = vmul.f32 %v1295_v37, %v1291_v36 }
0x15fd   :  { %1299 = vrot.lane.b32.xlu1 %v1297_v44, %s4151_s22 }
0x166f   :  { %v1300_v56 = vpop.permute.xlu1 %1299 }
0x1670   :  { %v1302_v62 = vadd.f32 %v1300_v56, %v1292_v50 }
0x1672   :  { %4034 = vtanh.f32 %v1302_v62 }
0x167c   :  { %v4035_v38 = vpop.eup %4034 }
0x167d   :  { %1305 = vrot.lane.b32.xlu0 %v4035_v38, %s4150_s4 }
0x16ef   :  { %v1306_v18 = vpop.permute.xlu0 %1305 }
0x16f0   :  { %v1308_v42 = vmul.f32 %v1306_v18, %v1291_v36  ;;  %v3015_v36 = vld [vmem:[%s5154_s5] ss:$0 sm:$0xff] }
0x16f1   :  { %v1630_v62 = vcombine.high %v3015_v36, %v3015_v36  ;;  %v4915_v5 = vrot.slane %v3015_v36, %v4264_v21 }
0x16f2   :  { %1310 = vrot.lane.b32.xlu1 %v1308_v42, %s4151_s22 }
0x16f3   :  { %v4918_v12 = vrot.slane %v1630_v62, %v4264_v21  ;;  %v4922_v53 = vcombine.high %v4915_v5, %v4915_v5 }
0x16f5   :  { %v4926_v15 = vcombine.high %v4918_v12, %v4918_v12 }
0x1764   :  { %v1311_v43 = vpop.permute.xlu1 %1310 }
0x1765   :  { %1314 = vst.msk [vmem:[#allocation3 + $0xe] sm:$0x3] %vm571_vm8, %v1311_v43 }
0x176c   :  { %v4827_v49 = vld [vmem:[#allocation3 + $0xe] sm:$0x3] }
0x176d   :  { %v1359_v55 = vcombine.low %v4825_v48, %v4827_v49 }
0x176f   :  { %v1373_v60 = vrot.slane %v1359_v55, %v4264_v21 }
0x1771   :  { %v1374_v63 = vcombine.low %v1366_v0, %v1373_v60 }
0x1773   :  { %3553 = vmatmul.mubr.msk.f32.vlgmr.msra.gmra.mrb[10].mxu0 %vm216_vm2, %v1374_v63 }
0x1774   :  { %3930 = vmatpush3.bf16.xpose.msk.msra.mxu0 %vm4279_vm3, %v4839_v61  ;;  %3563 = vmatprep.mubr.msk.f32.mxu0 %vm4148_vm4, %v4149_v19 }
0x1775   :  { %3931 = vmatprep.subr.bf16.mxu0 %v4147_v39 }
0x177c   :  { %3934 = vmatpush3.bf16.xpose.msk.msra.mxu0 %vm4279_vm3, %v4854_v3 }
0x177d   :  { %3935 = vmatprep.subr.bf16.mxu0 %v4147_v39 }
0x1783   :  { %3564 = vmatmul.mubr.msk.f32.vlgmr.msra.gmra.mrb[12].mxu0 %vm216_vm2, %v1311_v43 }
0x1784   :  { %3938 = vmatpush3.bf16.xpose.msk.msra.mxu0 %vm4279_vm3, %v4839_v61  ;;  %3574 = vmatprep.mubr.msk.f32.mxu0 %vm4148_vm4, %v4149_v19 }
0x1785   :  { %3939 = vmatprep.subr.bf16.mxu0 %v4147_v39 }
0x178c   :  { %3942 = vmatpush3.bf16.xpose.msk.msra.mxu0 %vm4279_vm3, %v4854_v3 }
0x178d   :  { %3943 = vmatprep.subr.bf16.mxu0 %v4147_v39 }
0x1846   :  { %v3554_v8 = vpop.f32.mrb[10].mxu0 }
0x1847   :  { %v1467_v11 = vpop.f32.mrb[11].mxu0  ;;  %v1473_v13 = vadd.f32 %v3554_v8, %v1383_v9 }
0x1848   :  { %v1468_v14 = vadd.f32 %v1467_v11, %v1383_v9 }
0x1849   :  { %v1495_v16 = vcombine.high %v1473_v13, %v1473_v13  ;;  %v4876_v17 = vrot.slane %v1473_v13, %v4264_v21 }
0x184a   :  { %v1478_v20 = vcombine.high %v1468_v14, %v1468_v14  ;;  %v4882_v23 = vrot.slane %v1468_v14, %v4264_v21 }
0x184b   :  { %v4879_v22 = vrot.slane %v1495_v16, %v4264_v21  ;;  %v4886_v24 = vcombine.high %v4876_v17, %v4876_v17 }
0x184c   :  { %v4889_v25 = vrot.slane %v1478_v20, %v4264_v21  ;;  %v4898_v31 = vcombine.high %v4882_v23, %v4882_v23 }
0x184d   :  { %v4893_v28 = vcombine.high %v4879_v22, %v4879_v22 }
0x184e   :  { %v4909_v37 = vcombine.high %v4889_v25, %v4889_v25 }
0x1856   :  { %v1605_v27 = vpop.f32.mrb[12].mxu0 }
0x1857   :  { %v1609_v29 = vadd.f32 %v1605_v27, %v4882_v23  ;;  %v3565_v30 = vpop.f32.mrb[13].mxu0  ;;  %v1613_v32 = vadd.f32 %v1605_v27, %v4876_v17  ;;  %v1614_v33 = vadd.f32 %v1605_v27, %v4886_v24  ;;  %v1615_v34 = vadd.f32 %v1605_v27, %v4879_v22 }
0x1858   :  { %v1616_v35 = vadd.f32 %v1605_v27, %v4893_v28  ;;  %v1610_v44 = vadd.f32 %v1605_v27, %v4898_v31  ;;  %v1611_v50 = vadd.f32 %v1605_v27, %v4889_v25  ;;  %v1612_v56 = vadd.f32 %v1605_v27, %v4909_v37 }
0x1859   :  { %4036 = vtanh.f32 %v1609_v29 }
0x185a   :  { %4038 = vtanh.f32 %v1613_v32  ;;  %v4152_v32 = vmov 0  }
0x185b   :  { %4040 = vtanh.f32 %v1614_v33  ;;  %3971 = vset.pattern.permute.xlu1 %v4152_v32  ;;  %3970 = vset.pattern.permute.xlu0 %v4152_v32  ;;  %v4153_v33 = vmov 269488144  }
0x185c   :  { %4042 = vtanh.f32 %v1615_v34  ;;  %v1712_v34 = vunpack.c.l.s4 %v4153_v33 }
0x185d   :  { %4044 = vtanh.f32 %v1616_v35  ;;  %v4154_v35 = vmov 842150450  }
0x185e   :  { %4046 = vtanh.f32 %v1610_v44  ;;  %v1719_v36 = vunpack.c.l.s4 %v4154_v35  ;;  %v4155_v44 = vmov 1414812756  }
0x185f   :  { %4048 = vtanh.f32 %v1611_v50  ;;  %v1726_v50 = vunpack.c.l.s4 %v4155_v44 }
0x1860   :  { %4050 = vtanh.f32 %v1612_v56  ;;  %v4156_v56 = vmov 1987475062  }
0x1861   :  { %v1733_v62 = vunpack.c.l.s4 %v4156_v56 }
0x1863   :  { %v4037_v38 = vpop.eup %4036 }
0x1864   :  { %v4039_v40 = vpop.eup %4038  ;;  %v1651_v58 = vmul.f32 %v4037_v38, %v4915_v5  ;;  %v1713_v38 = vunpack.c.0.s8 %v1712_v34 }
0x1865   :  { %v4041_v41 = vpop.eup %4040  ;;  %v1655_v18 = vmul.f32 %v4039_v40, %v4915_v5  ;;  %v1720_v40 = vunpack.c.0.s8 %v1719_v36 }
0x1866   :  { %v4043_v42 = vpop.eup %4042  ;;  %v1656_v43 = vmul.f32 %v4041_v41, %v4922_v53  ;;  %v1727_v41 = vunpack.c.0.s8 %v1726_v50 }
0x1867   :  { %v4045_v47 = vpop.eup %4044  ;;  %v1657_v55 = vmul.f32 %v4043_v42, %v4918_v12  ;;  %v4943_v42 = vsub.s32 %v1713_v38, %v4239_v10 }
0x1868   :  { %v4047_v59 = vpop.eup %4046  ;;  %v1658_v0 = vmul.f32 %v4045_v47, %v4926_v15  ;;  %v1684_v60 = vcombine.low %v1655_v18, %v1656_v43  ;;  %v1734_v18 = vunpack.c.0.s8 %v1733_v62  ;;  %v4946_v43 = vsub.s32 %v1720_v40, %v4239_v10 }
0x1869   :  { %v4049_v63 = vpop.eup %4048  ;;  %v1652_v1 = vmul.f32 %v4047_v59, %v4922_v53  ;;  %v4949_v47 = vsub.s32 %v1727_v41, %v4239_v10 }
0x186a   :  { %v4051_v2 = vpop.eup %4050  ;;  %v1685_v4 = vcombine.low %v1657_v55, %v1658_v0  ;;  %v1692_v6 = vrot.slane %v1684_v60, %v4264_v21  ;;  %v1653_v7 = vmul.f32 %v4049_v63, %v4918_v12  ;;  %v4952_v55 = vsub.s32 %v1734_v18, %v4239_v10 }
0x186b   :  { %v1654_v8 = vmul.f32 %v4051_v2, %v4926_v15  ;;  %v1667_v9 = vcombine.low %v1651_v58, %v1652_v1 }
0x186c   :  { %v1699_v11 = vrot.slane %v1685_v4, %v4264_v21 }
0x186d   :  { %v1668_v13 = vcombine.low %v1653_v7, %v1654_v8  ;;  %v1675_v14 = vrot.slane %v1667_v9, %v4264_v21 }
0x186e   :  { %v1700_v16 = vcombine.low %v1692_v6, %v1699_v11 }
0x186f   :  { %v1682_v20 = vrot.slane %v1668_v13, %v4264_v21 }
0x1870   :  { %v1706_v27 = vsel %vm216_vm2, %v1700_v16, 0.0 }
0x1871   :  { %1707 = vadd.xlane.f32.xlu1 %v1706_v27  ;;  %v1683_v29 = vcombine.low %v1675_v14, %v1682_v20 }
0x1873   :  { %v1703_v30 = vsel %vm216_vm2, %v1683_v29, 0.0 }
0x1874   :  { %1704 = vadd.xlane.f32.xlu0 %v1703_v30 }
0x18fe   :  { %v1708_v58 = vpop.xlane.xlu1 %1707 }
0x18ff   :  { %v1745_v59 = vrot.slane %v1708_v58, %v4943_v42  ;;  %v1752_v0 = vrot.slane %v1708_v58, %v4946_v43  ;;  %v1759_v60 = vrot.slane %v1708_v58, %v4949_v47  ;;  %v1766_v63 = vrot.slane %v1708_v58, %v4952_v55 }
0x1901   :  { %v1705_v1 = vpop.xlane.xlu0 %1704 }
0x1902   :  { %v1717_v2 = vrot.slane %v1705_v1, %v4943_v42  ;;  %v1724_v4 = vrot.slane %v1705_v1, %v4946_v43  ;;  %v1731_v6 = vrot.slane %v1705_v1, %v4949_v47  ;;  %v1738_v7 = vrot.slane %v1705_v1, %v4952_v55 }
0x1904   :  { %v1775_v10 = vmax.f32 %v1717_v2, %v1745_v59  ;;  %v1776_v8 = vmax.f32 %v1724_v4, %v1752_v0  ;;  %v1777_v9 = vmax.f32 %v1731_v6, %v1759_v60  ;;  %v1778_v11 = vmax.f32 %v1738_v7, %v1766_v63 }
0x1906   :  { %v1779_v13 = vmax.f32 %v1775_v10, %v1776_v8  ;;  %v1780_v14 = vmax.f32 %v1777_v9, %v1778_v11 }
0x1908   :  { %v1781_v16 = vmax.f32 %v1779_v13, %v1780_v14 }
0x190a   :  { %v1782_v20 = vsub.f32 %v1717_v2, %v1781_v16  ;;  %v1783_v27 = vsub.f32 %v1724_v4, %v1781_v16  ;;  %v1784_v29 = vsub.f32 %v1731_v6, %v1781_v16  ;;  %v1785_v30 = vsub.f32 %v1738_v7, %v1781_v16 }
0x190b   :  { %v1786_v32 = vsub.f32 %v1745_v59, %v1781_v16  ;;  %v1787_v36 = vsub.f32 %v1752_v0, %v1781_v16  ;;  %v1788_v50 = vsub.f32 %v1759_v60, %v1781_v16  ;;  %v1789_v62 = vsub.f32 %v1766_v63, %v1781_v16 }
0x190c   :  { %v1790_v33 = vmul.f32 1.442695, %v1782_v20  ;;  %v1792_v34 = vmul.f32 1.442695, %v1783_v27  ;;  %v1794_v35 = vmul.f32 1.442695, %v1784_v29 }
0x190d   :  { %v1796_v44 = vmul.f32 1.442695, %v1785_v30  ;;  %v1798_v56 = vmul.f32 1.442695, %v1786_v32  ;;  %v1800_v38 = vmul.f32 1.442695, %v1787_v36 }
0x190e   :  { %4052 = vpow2.f32 %v1790_v33  ;;  %v1802_v40 = vmul.f32 1.442695, %v1788_v50  ;;  %v1804_v41 = vmul.f32 1.442695, %v1789_v62 }
0x190f   :  { %4054 = vpow2.f32 %v1792_v34 }
0x1910   :  { %4056 = vpow2.f32 %v1794_v35 }
0x1911   :  { %4058 = vpow2.f32 %v1796_v44 }
0x1912   :  { %4060 = vpow2.f32 %v1798_v56 }
0x1913   :  { %4062 = vpow2.f32 %v1800_v38 }
0x1914   :  { %4064 = vpow2.f32 %v1802_v40 }
0x1915   :  { %4066 = vpow2.f32 %v1804_v41 }
0x1918   :  { %v4053_v18 = vpop.eup %4052 }
0x1919   :  { %v4055_v58 = vpop.eup %4054  ;;  %v1807_v59 = vsel %vm1806_vm9, %v4053_v18, 0.0 }
0x191a   :  { %v4057_v0 = vpop.eup %4056  ;;  %v1808_v60 = vsel %vm1806_vm9, %v4055_v58, 0.0 }
0x191b   :  { %v4059_v1 = vpop.eup %4058  ;;  %v1809_v2 = vadd.f32 %v1808_v60, %v1807_v59  ;;  %v1810_v63 = vsel %vm1806_vm9, %v4057_v0, 0.0 }
0x191c   :  { %v4061_v4 = vpop.eup %4060  ;;  %v1812_v7 = vsel %vm1806_vm9, %v4059_v1, 0.0 }
0x191d   :  { %v1811_v6 = vadd.f32 %v1810_v63, %v1809_v2  ;;  %v4063_v10 = vpop.eup %4062  ;;  %v1814_v9 = vsel %vm1806_vm9, %v4061_v4, 0.0 }
0x191e   :  { %v4065_v11 = vpop.eup %4064  ;;  %v1816_v14 = vsel %vm1806_vm9, %v4063_v10, 0.0 }
0x191f   :  { %v1813_v8 = vadd.f32 %v1812_v7, %v1811_v6  ;;  %v4067_v16 = vpop.eup %4066  ;;  %v1818_v27 = vsel %vm1806_vm9, %v4065_v11, 0.0 }
0x1920   :  { %v1820_v30 = vsel %vm1806_vm9, %v4067_v16, 0.0 }
0x1921   :  { %v1815_v13 = vadd.f32 %v1814_v9, %v1813_v8 }
0x1923   :  { %v1817_v20 = vadd.f32 %v1816_v14, %v1815_v13 }
0x1925   :  { %v1819_v29 = vadd.f32 %v1818_v27, %v1817_v20 }
0x1927   :  { %v1821_v32 = vadd.f32 %v1820_v30, %v1819_v29 }
0x1929   :  { %4068 = vrcp.f32 %v1821_v32 }
0x1933   :  { %v4069_v33 = vpop.eup %4068 }
0x1934   :  { %v1824_v34 = vmul.f32 %v4069_v33, %v4055_v58  ;;  %v1823_v35 = vmul.f32 %v4069_v33, %v4053_v18  ;;  %v1825_v36 = vmul.f32 %v4069_v33, %v4057_v0  ;;  %v1826_v44 = vmul.f32 %v4069_v33, %v4059_v1 }
0x1935   :  { %v1827_v50 = vmul.f32 %v4069_v33, %v4061_v4  ;;  %v1828_v56 = vmul.f32 %v4069_v33, %v4063_v10  ;;  %v1829_v62 = vmul.f32 %v4069_v33, %v4065_v11  ;;  %v1830_v38 = vmul.f32 %v4069_v33, %v4067_v16 }
0x1936   :  { %1845 = vperm.xlu1 %3971, %v1824_v34   ;;  %1833 = vperm.xlu0 %3970, %v1823_v35  }
0x193a   :  { %1857 = vperm.xlu1 %3971, %v1825_v36  }
0x193e   :  { %1869 = vperm.xlu1 %3971, %v1826_v44  }
0x1942   :  { %1881 = vperm.xlu1 %3971, %v1827_v50  }
0x1946   :  { %1893 = vperm.xlu1 %3971, %v1828_v56  }
0x194a   :  { %1905 = vperm.xlu1 %3971, %v1829_v62  }
0x194e   :  { %1917 = vperm.xlu1 %3971, %v1830_v38  }
0x19b5   :  { %v1846_v40 = vpop.permute.xlu1 %1845  ;;  %v1834_v41 = vpop.permute.xlu0 %1833 }
0x19b6   :  { %v1854_v58 = vrot.slane %v1846_v40, %v4943_v42  ;;  %v1842_v18 = vrot.slane %v1834_v41, %v4943_v42 }
0x19b8   :  { %v1928_v1 = vmul.f32 %v1854_v58, %v4766_v52  ;;  %v1927_v2 = vmul.f32 %v1842_v18, %v4772_v57 }
0x19b9   :  { %v1858_v59 = vpop.permute.xlu1 %1857 }
0x19ba   :  { %v1866_v0 = vrot.slane %v1858_v59, %v4943_v42  ;;  %v1936_v10 = vsel %vm571_vm8, %v1928_v1, 0.0  ;;  %v1935_v8 = vsel %vm571_vm8, %v1927_v2, 0.0 }
0x19bb   :  { %v1937_v20 = vadd.f32 %v1936_v10, %v1935_v8 }
0x19bc   :  { %v1929_v6 = vmul.f32 %v1866_v0, %v4768_v54 }
0x19bd   :  { %v1870_v60 = vpop.permute.xlu1 %1869 }
0x19be   :  { %v1878_v63 = vrot.slane %v1870_v60, %v4943_v42  ;;  %v1938_v13 = vsel %vm571_vm8, %v1929_v6, 0.0 }
0x19bf   :  { %v1939_v30 = vadd.f32 %v1938_v13, %v1937_v20 }
0x19c0   :  { %v1930_v9 = vmul.f32 %v1878_v63, %v4764_v51 }
0x19c1   :  { %v1882_v4 = vpop.permute.xlu1 %1881 }
0x19c2   :  { %v1890_v7 = vrot.slane %v1882_v4, %v4943_v42  ;;  %v1940_v27 = vsel %vm571_vm8, %v1930_v9, 0.0 }
0x19c3   :  { %v1941_v35 = vadd.f32 %v1940_v27, %v1939_v30 }
0x19c4   :  { %v1931_v14 = vmul.f32 %v1890_v7, %v4821_v46 }
0x19c5   :  { %v1894_v11 = vpop.permute.xlu1 %1893 }
0x19c6   :  { %v1902_v16 = vrot.slane %v1894_v11, %v4943_v42  ;;  %v1942_v33 = vsel %vm571_vm8, %v1931_v14, 0.0 }
0x19c7   :  { %v1943_v50 = vadd.f32 %v1942_v33, %v1941_v35 }
0x19c8   :  { %v1932_v29 = vmul.f32 %v1902_v16, %v4819_v45 }
0x19c9   :  { %v1906_v32 = vpop.permute.xlu1 %1905 }
0x19ca   :  { %v1914_v34 = vrot.slane %v1906_v32, %v4943_v42  ;;  %v1944_v36 = vsel %vm571_vm8, %v1932_v29, 0.0 }
0x19cb   :  { %v1945_v40 = vadd.f32 %v1944_v36, %v1943_v50 }
0x19cc   :  { %v1933_v44 = vmul.f32 %v1914_v34, %v4825_v48 }
0x19cd   :  { %v1918_v56 = vpop.permute.xlu1 %1917 }
0x19ce   :  { %v1946_v62 = vsel %vm571_vm8, %v1933_v44, 0.0  ;;  %v1926_v38 = vrot.slane %v1918_v56, %v4943_v42 }
0x19cf   :  { %v1947_v59 = vadd.f32 %v1946_v62, %v1945_v40 }
0x19d0   :  { %v1934_v41 = vmul.f32 %v1926_v38, %v4827_v49 }
0x19d2   :  { %v1948_v58 = vsel %vm571_vm8, %v1934_v41, 0.0 }
0x19d3   :  { %v1949_v18 = vadd.f32 %v1948_v58, %v1947_v59 }
0x19d5   :  { %3575 = vmatmul.mubr.msk.f32.vlgmr.msra.gmra.mrb[14].mxu0 %vm216_vm2, %v1949_v18 }
0x19d6   :  { %3946 = vmatpush3.bf16.xpose.msk.msra.mxu0 %vm4279_vm3, %v4839_v61  ;;  %3585 = vmatprep.mubr.msk.f32.mxu0 %vm4148_vm4, %v4149_v19 }
0x19d7   :  { %3947 = vmatprep.subr.bf16.mxu0 %v4147_v39 }
0x19de   :  { %3950 = vmatpush3.bf16.xpose.msk.msra.mxu0 %vm4279_vm3, %v4854_v3 }
0x1aa8   :  { %v2019_v60 = vpop.f32.mrb[14].mxu0 }
0x1aa9   :  { %v2023_v0 = vadd.f32 %v2019_v60, %v4882_v23  ;;  %v3576_v1 = vpop.f32.mrb[15].mxu0  ;;  %v2027_v2 = vadd.f32 %v2019_v60, %v4876_v17  ;;  %v2028_v63 = vadd.f32 %v2019_v60, %v4886_v24  ;;  %v2029_v4 = vadd.f32 %v2019_v60, %v4879_v22 }
0x1aaa   :  { %v2030_v61 = vadd.f32 %v2019_v60, %v4893_v28  ;;  %v2024_v19 = vadd.f32 %v2019_v60, %v4898_v31  ;;  %v2025_v6 = vadd.f32 %v2019_v60, %v4889_v25  ;;  %v2026_v3 = vadd.f32 %v2019_v60, %v4909_v37 }
0x1aab   :  { %4070 = vtanh.f32 %v2023_v0 }
0x1aac   :  { %4072 = vtanh.f32 %v2027_v2 }
0x1aad   :  { %4074 = vtanh.f32 %v2028_v63 }
0x1aae   :  { %4076 = vtanh.f32 %v2029_v4 }
0x1aaf   :  { %4078 = vtanh.f32 %v2030_v61 }
0x1ab0   :  { %4080 = vtanh.f32 %v2024_v19 }
0x1ab1   :  { %4082 = vtanh.f32 %v2025_v6 }
0x1ab2   :  { %4084 = vtanh.f32 %v2026_v3 }
0x1ab5   :  { %v4071_v7 = vpop.eup %4070 }
0x1ab6   :  { %v4073_v10 = vpop.eup %4072  ;;  %v2039_v20 = vmul.f32 %v4071_v7, %v4915_v5 }
0x1ab7   :  { %v4075_v8 = vpop.eup %4074  ;;  %v2043_v9 = vmul.f32 %v4073_v10, %v4915_v5 }
0x1ab8   :  { %v4077_v11 = vpop.eup %4076  ;;  %v2044_v13 = vmul.f32 %v4075_v8, %v4922_v53 }
0x1ab9   :  { %v4079_v14 = vpop.eup %4078  ;;  %v2045_v16 = vmul.f32 %v4077_v11, %v4918_v12 }
0x1aba   :  { %v4081_v27 = vpop.eup %4080  ;;  %v2046_v29 = vmul.f32 %v4079_v14, %v4926_v15  ;;  %v2072_v30 = vcombine.low %v2043_v9, %v2044_v13 }
0x1abb   :  { %v4083_v32 = vpop.eup %4082  ;;  %v2040_v33 = vmul.f32 %v4081_v27, %v4922_v53 }
0x1abc   :  { %v4085_v34 = vpop.eup %4084  ;;  %v2073_v35 = vcombine.low %v2045_v16, %v2046_v29  ;;  %v2080_v36 = vrot.slane %v2072_v30, %v4264_v21  ;;  %v2041_v44 = vmul.f32 %v4083_v32, %v4918_v12 }
0x1abd   :  { %v2042_v50 = vmul.f32 %v4085_v34, %v4926_v15  ;;  %v2055_v56 = vcombine.low %v2039_v20, %v2040_v33 }
0x1abe   :  { %v2087_v62 = vrot.slane %v2073_v35, %v4264_v21 }
0x1abf   :  { %v2056_v38 = vcombine.low %v2041_v44, %v2042_v50  ;;  %v2063_v40 = vrot.slane %v2055_v56, %v4264_v21 }
0x1ac0   :  { %v2088_v41 = vcombine.low %v2080_v36, %v2087_v62 }
0x1ac1   :  { %v2070_v59 = vrot.slane %v2056_v38, %v4264_v21 }
0x1ac2   :  { %v2094_v58 = vsel %vm216_vm2, %v2088_v41, 0.0 }
0x1ac3   :  { %2095 = vadd.xlane.f32.xlu1 %v2094_v58  ;;  %v2071_v18 = vcombine.low %v2063_v40, %v2070_v59 }
0x1ac5   :  { %v2091_v60 = vsel %vm216_vm2, %v2071_v18, 0.0 }
0x1ac6   :  { %2092 = vadd.xlane.f32.xlu0 %v2091_v60 }
0x1b50   :  { %v2096_v0 = vpop.xlane.xlu1 %2095 }
0x1b51   :  { %v2133_v1 = vrot.slane %v2096_v0, %v4943_v42  ;;  %v2140_v2 = vrot.slane %v2096_v0, %v4946_v43  ;;  %v2147_v63 = vrot.slane %v2096_v0, %v4949_v47  ;;  %v2154_v4 = vrot.slane %v2096_v0, %v4952_v55 }
0x1b53   :  { %v2093_v61 = vpop.xlane.xlu0 %2092 }
0x1b54   :  { %v2105_v19 = vrot.slane %v2093_v61, %v4943_v42  ;;  %v2112_v6 = vrot.slane %v2093_v61, %v4946_v43  ;;  %v2119_v3 = vrot.slane %v2093_v61, %v4949_v47  ;;  %v2126_v7 = vrot.slane %v2093_v61, %v4952_v55 }
0x1b56   :  { %v2163_v10 = vmax.f32 %v2105_v19, %v2133_v1  ;;  %v2164_v8 = vmax.f32 %v2112_v6, %v2140_v2  ;;  %v2165_v9 = vmax.f32 %v2119_v3, %v2147_v63  ;;  %v2166_v11 = vmax.f32 %v2126_v7, %v2154_v4 }
0x1b58   :  { %v2167_v13 = vmax.f32 %v2163_v10, %v2164_v8  ;;  %v2168_v14 = vmax.f32 %v2165_v9, %v2166_v11 }
0x1b5a   :  { %v2169_v16 = vmax.f32 %v2167_v13, %v2168_v14 }
0x1b5c   :  { %v2170_v20 = vsub.f32 %v2105_v19, %v2169_v16  ;;  %v2171_v27 = vsub.f32 %v2112_v6, %v2169_v16  ;;  %v2172_v29 = vsub.f32 %v2119_v3, %v2169_v16  ;;  %v2173_v30 = vsub.f32 %v2126_v7, %v2169_v16 }
0x1b5d   :  { %v2174_v32 = vsub.f32 %v2133_v1, %v2169_v16  ;;  %v2175_v36 = vsub.f32 %v2140_v2, %v2169_v16  ;;  %v2176_v50 = vsub.f32 %v2147_v63, %v2169_v16  ;;  %v2177_v62 = vsub.f32 %v2154_v4, %v2169_v16 }
0x1b5e   :  { %v2178_v33 = vmul.f32 1.442695, %v2170_v20  ;;  %v2180_v34 = vmul.f32 1.442695, %v2171_v27  ;;  %v2182_v35 = vmul.f32 1.442695, %v2172_v29 }
0x1b5f   :  { %v2184_v44 = vmul.f32 1.442695, %v2173_v30  ;;  %v2186_v56 = vmul.f32 1.442695, %v2174_v32  ;;  %v2188_v38 = vmul.f32 1.442695, %v2175_v36 }
0x1b60   :  { %4086 = vpow2.f32 %v2178_v33  ;;  %v2190_v40 = vmul.f32 1.442695, %v2176_v50  ;;  %v2192_v41 = vmul.f32 1.442695, %v2177_v62 }
0x1b61   :  { %4088 = vpow2.f32 %v2180_v34 }
0x1b62   :  { %4090 = vpow2.f32 %v2182_v35 }
0x1b63   :  { %4092 = vpow2.f32 %v2184_v44 }
0x1b64   :  { %4094 = vpow2.f32 %v2186_v56 }
0x1b65   :  { %4096 = vpow2.f32 %v2188_v38 }
0x1b66   :  { %4098 = vpow2.f32 %v2190_v40 }
0x1b67   :  { %4100 = vpow2.f32 %v2192_v41 }
0x1b6a   :  { %v4087_v59 = vpop.eup %4086 }
0x1b6b   :  { %v4089_v58 = vpop.eup %4088  ;;  %v2194_v18 = vsel %vm1806_vm9, %v4087_v59, 0.0 }
0x1b6c   :  { %v4091_v60 = vpop.eup %4090  ;;  %v2195_v0 = vsel %vm1806_vm9, %v4089_v58, 0.0 }
0x1b6d   :  { %v4093_v1 = vpop.eup %4092  ;;  %v2196_v2 = vadd.f32 %v2195_v0, %v2194_v18  ;;  %v2197_v63 = vsel %vm1806_vm9, %v4091_v60, 0.0 }
0x1b6e   :  { %v4095_v4 = vpop.eup %4094  ;;  %v2199_v19 = vsel %vm1806_vm9, %v4093_v1, 0.0 }
0x1b6f   :  { %v2198_v61 = vadd.f32 %v2197_v63, %v2196_v2  ;;  %v4097_v6 = vpop.eup %4096  ;;  %v2201_v7 = vsel %vm1806_vm9, %v4095_v4, 0.0 }
0x1b70   :  { %v4099_v10 = vpop.eup %4098  ;;  %v2203_v9 = vsel %vm1806_vm9, %v4097_v6, 0.0 }
0x1b71   :  { %v2200_v3 = vadd.f32 %v2199_v19, %v2198_v61  ;;  %v4101_v11 = vpop.eup %4100  ;;  %v2205_v14 = vsel %vm1806_vm9, %v4099_v10, 0.0 }
0x1b72   :  { %v2207_v20 = vsel %vm1806_vm9, %v4101_v11, 0.0 }
0x1b73   :  { %v2202_v8 = vadd.f32 %v2201_v7, %v2200_v3 }
0x1b75   :  { %v2204_v13 = vadd.f32 %v2203_v9, %v2202_v8 }
0x1b77   :  { %v2206_v16 = vadd.f32 %v2205_v14, %v2204_v13 }
0x1b79   :  { %v2208_v27 = vadd.f32 %v2207_v20, %v2206_v16 }
0x1b7b   :  { %4102 = vrcp.f32 %v2208_v27 }
0x1b85   :  { %v4103_v29 = vpop.eup %4102 }
0x1b86   :  { %v2211_v30 = vmul.f32 %v4103_v29, %v4089_v58  ;;  %v2210_v32 = vmul.f32 %v4103_v29, %v4087_v59  ;;  %v2213_v33 = vmul.f32 %v4103_v29, %v4093_v1  ;;  %v2212_v34 = vmul.f32 %v4103_v29, %v4091_v60 }
0x1b87   :  { %v2215_v35 = vmul.f32 %v4103_v29, %v4097_v6  ;;  %v2214_v36 = vmul.f32 %v4103_v29, %v4095_v4  ;;  %v2217_v44 = vmul.f32 %v4103_v29, %v4101_v11  ;;  %v2216_v50 = vmul.f32 %v4103_v29, %v4099_v10 }
0x1b88   :  { %2232 = vperm.xlu1 %3971, %v2211_v30   ;;  %2220 = vperm.xlu0 %3970, %v2210_v32  }
0x1b8c   :  { %2256 = vperm.xlu1 %3971, %v2213_v33   ;;  %2244 = vperm.xlu0 %3970, %v2212_v34  }
0x1b90   :  { %2280 = vperm.xlu1 %3971, %v2215_v35   ;;  %2268 = vperm.xlu0 %3970, %v2214_v36  }
0x1b94   :  { %2304 = vperm.xlu1 %3971, %v2217_v44   ;;  %2292 = vperm.xlu0 %3970, %v2216_v50  }
0x1c07   :  { %v2233_v56 = vpop.permute.xlu1 %2232  ;;  %v2221_v62 = vpop.permute.xlu0 %2220 }
0x1c08   :  { %v2241_v38 = vrot.slane %v2233_v56, %v4943_v42  ;;  %v2229_v40 = vrot.slane %v2221_v62, %v4943_v42 }
0x1c0a   :  { %v2315_v41 = vmul.f32 %v2241_v38, %v4766_v52  ;;  %v2314_v59 = vmul.f32 %v2229_v40, %v4772_v57 }
0x1c0b   :  { %v2257_v58 = vpop.permute.xlu1 %2256  ;;  %v2245_v18 = vpop.permute.xlu0 %2244 }
0x1c0c   :  { %v2323_v60 = vsel %vm571_vm8, %v2315_v41, 0.0  ;;  %v2322_v0 = vsel %vm571_vm8, %v2314_v59, 0.0  ;;  %v2265_v1 = vrot.slane %v2257_v58, %v4943_v42  ;;  %v2253_v2 = vrot.slane %v2245_v18, %v4943_v42 }
0x1c0d   :  { %v2324_v61 = vadd.f32 %v2323_v60, %v2322_v0 }
0x1c0e   :  { %v2317_v63 = vmul.f32 %v2265_v1, %v4764_v51  ;;  %v2316_v4 = vmul.f32 %v2253_v2, %v4768_v54 }
0x1c0f   :  { %v2281_v19 = vpop.permute.xlu1 %2280  ;;  %v2269_v6 = vpop.permute.xlu0 %2268 }
0x1c10   :  { %v2325_v52 = vsel %vm571_vm8, %v2316_v4, 0.0  ;;  %v2289_v57 = vrot.slane %v2281_v19, %v4943_v42  ;;  %v2277_v3 = vrot.slane %v2269_v6, %v4943_v42  ;;  %v2327_v10 = vsel %vm571_vm8, %v2317_v63, 0.0 }
0x1c11   :  { %v2326_v7 = vadd.f32 %v2325_v52, %v2324_v61 }
0x1c12   :  { %v2319_v8 = vmul.f32 %v2289_v57, %v4819_v45  ;;  %v2318_v9 = vmul.f32 %v2277_v3, %v4821_v46 }
0x1c13   :  { %v2328_v11 = vadd.f32 %v2327_v10, %v2326_v7  ;;  %v2305_v51 = vpop.permute.xlu1 %2304  ;;  %v2293_v13 = vpop.permute.xlu0 %2292 }
0x1c14   :  { %v2329_v54 = vsel %vm571_vm8, %v2318_v9, 0.0  ;;  %v2313_v14 = vrot.slane %v2305_v51, %v4943_v42  ;;  %v2301_v16 = vrot.slane %v2293_v13, %v4943_v42  ;;  %v2331_v27 = vsel %vm571_vm8, %v2319_v8, 0.0 }
0x1c15   :  { %v2330_v20 = vadd.f32 %v2329_v54, %v2328_v11 }
0x1c16   :  { %v2321_v29 = vmul.f32 %v2313_v14, %v4827_v49  ;;  %v2320_v30 = vmul.f32 %v2301_v16, %v4825_v48 }
0x1c17   :  { %v2332_v32 = vadd.f32 %v2331_v27, %v2330_v20 }
0x1c18   :  { %v2333_v45 = vsel %vm571_vm8, %v2320_v30, 0.0  ;;  %v2335_v33 = vsel %vm571_vm8, %v2321_v29, 0.0 }
0x1c19   :  { %v2334_v46 = vadd.f32 %v2333_v45, %v2332_v32 }
0x1c1b   :  { %v2336_v34 = vadd.f32 %v2335_v33, %v2334_v46 }
0x1c1d   :  { %3586 = vmatmul.mubr.msk.f32.vlgmr.msra.gmra.mrb[16].mxu0 %vm216_vm2, %v2336_v34 }
0x1cf0   :  { %v2406_v35 = vpop.f32.mrb[16].mxu0 }
0x1cf1   :  { %v2410_v36 = vadd.f32 %v2406_v35, %v4882_v23  ;;  %v3587_v44 = vpop.f32.mrb[17].mxu0  ;;  %v2414_v50 = vadd.f32 %v2406_v35, %v4876_v17  ;;  %v2415_v56 = vadd.f32 %v2406_v35, %v4886_v24  ;;  %v2416_v49 = vadd.f32 %v2406_v35, %v4879_v22 }
0x1cf2   :  { %v2417_v48 = vadd.f32 %v2406_v35, %v4893_v28  ;;  %v2411_v62 = vadd.f32 %v2406_v35, %v4898_v31  ;;  %v2412_v38 = vadd.f32 %v2406_v35, %v4889_v25  ;;  %v2413_v40 = vadd.f32 %v2406_v35, %v4909_v37 }
0x1cf3   :  { %4104 = vtanh.f32 %v2410_v36 }
0x1cf4   :  { %4106 = vtanh.f32 %v2414_v50 }
0x1cf5   :  { %4108 = vtanh.f32 %v2415_v56 }
0x1cf6   :  { %4110 = vtanh.f32 %v2416_v49 }
0x1cf7   :  { %4112 = vtanh.f32 %v2417_v48 }
0x1cf8   :  { %4114 = vtanh.f32 %v2411_v62 }
0x1cf9   :  { %4116 = vtanh.f32 %v2412_v38 }
0x1cfa   :  { %4118 = vtanh.f32 %v2413_v40 }
0x1cfd   :  { %v4105_v17 = vpop.eup %4104 }
0x1cfe   :  { %v4107_v23 = vpop.eup %4106  ;;  %v2426_v25 = vmul.f32 %v4105_v17, %v4915_v5 }
0x1cff   :  { %v4109_v24 = vpop.eup %4108  ;;  %v2430_v22 = vmul.f32 %v4107_v23, %v4915_v5 }
0x1d00   :  { %v4111_v28 = vpop.eup %4110  ;;  %v2431_v41 = vmul.f32 %v4109_v24, %v4922_v53 }
0x1d01   :  { %v4113_v31 = vpop.eup %4112  ;;  %v2432_v59 = vmul.f32 %v4111_v28, %v4918_v12 }
0x1d02   :  { %v4115_v58 = vpop.eup %4114  ;;  %v2433_v37 = vmul.f32 %v4113_v31, %v4926_v15  ;;  %v2459_v18 = vcombine.low %v2430_v22, %v2431_v41 }
0x1d03   :  { %v4117_v60 = vpop.eup %4116  ;;  %v2427_v0 = vmul.f32 %v4115_v58, %v4922_v53 }
0x1d04   :  { %v4119_v1 = vpop.eup %4118  ;;  %v2460_v2 = vcombine.low %v2432_v59, %v2433_v37  ;;  %v2467_v63 = vrot.slane %v2459_v18, %v4264_v21  ;;  %v2428_v4 = vmul.f32 %v4117_v60, %v4918_v12 }
0x1d05   :  { %v2429_v61 = vmul.f32 %v4119_v1, %v4926_v15  ;;  %v2442_v19 = vcombine.low %v2426_v25, %v2427_v0 }
0x1d06   :  { %v2474_v6 = vrot.slane %v2460_v2, %v4264_v21 }
0x1d07   :  { %v2443_v52 = vcombine.low %v2428_v4, %v2429_v61  ;;  %v2450_v5 = vrot.slane %v2442_v19, %v4264_v21 }
0x1d08   :  { %v2475_v57 = vcombine.low %v2467_v63, %v2474_v6 }
0x1d09   :  { %v2457_v3 = vrot.slane %v2443_v52, %v4264_v21 }
0x1d0a   :  { %v2481_v7 = vsel %vm216_vm2, %v2475_v57, 0.0 }
0x1d0b   :  { %2482 = vadd.xlane.f32.xlu1 %v2481_v7  ;;  %v2458_v53 = vcombine.low %v2450_v5, %v2457_v3 }
0x1d0d   :  { %v2478_v10 = vsel %vm216_vm2, %v2458_v53, 0.0 }
0x1d0e   :  { %2479 = vadd.xlane.f32.xlu0 %v2478_v10 }
0x1d98   :  { %v2483_v8 = vpop.xlane.xlu1 %2482 }
0x1d99   :  { %v2520_v12 = vrot.slane %v2483_v8, %v4943_v42  ;;  %v2527_v15 = vrot.slane %v2483_v8, %v4946_v43  ;;  %v2534_v9 = vrot.slane %v2483_v8, %v4949_v47  ;;  %v2541_v11 = vrot.slane %v2483_v8, %v4952_v55 }
0x1d9b   :  { %v2480_v51 = vpop.xlane.xlu0 %2479 }
0x1d9c   :  { %v2492_v13 = vrot.slane %v2480_v51, %v4943_v42  ;;  %v2499_v21 = vrot.slane %v2480_v51, %v4946_v43  ;;  %v2506_v54 = vrot.slane %v2480_v51, %v4949_v47  ;;  %v2513_v14 = vrot.slane %v2480_v51, %v4952_v55 }
0x1d9e   :  { %v2550_v16 = vmax.f32 %v2492_v13, %v2520_v12  ;;  %v2551_v20 = vmax.f32 %v2499_v21, %v2527_v15  ;;  %v2552_v27 = vmax.f32 %v2506_v54, %v2534_v9  ;;  %v2553_v29 = vmax.f32 %v2513_v14, %v2541_v11 }
0x1da0   :  { %v2554_v30 = vmax.f32 %v2550_v16, %v2551_v20  ;;  %v2555_v32 = vmax.f32 %v2552_v27, %v2553_v29 }
0x1da2   :  { %v2556_v45 = vmax.f32 %v2554_v30, %v2555_v32  ;;  %v4138_v30 = vld [vmem:[#allocation3 + $0x2] sm:$0x3]  ;;  %v4139_v32 = vld [vmem:[#allocation3] sm:$0x3] }
0x1da4   :  { %v2557_v46 = vsub.f32 %v2492_v13, %v2556_v45  ;;  %v2558_v33 = vsub.f32 %v2499_v21, %v2556_v45  ;;  %v2559_v34 = vsub.f32 %v2506_v54, %v2556_v45  ;;  %v2560_v35 = vsub.f32 %v2513_v14, %v2556_v45  ;;  %v2726_v21 = vld [vmem:[%s5155_s9 + $0x10] sm:$0xff]  ;;  %v2727_v54 = vld [vmem:[%s5155_s9 + $0x18] sm:$0xff] }
0x1da5   :  { %v2561_v36 = vsub.f32 %v2520_v12, %v2556_v45  ;;  %v2562_v43 = vsub.f32 %v2527_v15, %v2556_v45  ;;  %v2563_v47 = vsub.f32 %v2534_v9, %v2556_v45  ;;  %v2564_v48 = vsub.f32 %v2541_v11, %v2556_v45  ;;  %v2724_v15 = vld [vmem:[%s5155_s9] sm:$0xff]  ;;  %v2725_v9 = vld [vmem:[%s5155_s9 + $0x8] sm:$0xff] }
0x1da6   :  { %v2565_v44 = vmul.f32 1.442695, %v2557_v46  ;;  %v2567_v50 = vmul.f32 1.442695, %v2558_v33  ;;  %v2569_v56 = vmul.f32 1.442695, %v2559_v34  ;;  %v3952_v13 = vpack.c.bf16 %v2725_v9, %v2724_v15 }
0x1da7   :  { %v2571_v49 = vmul.f32 1.442695, %v2560_v35  ;;  %v2573_v55 = vmul.f32 1.442695, %v2561_v36  ;;  %v2575_v62 = vmul.f32 1.442695, %v2562_v43  ;;  %v3956_v14 = vpack.c.bf16 %v2727_v54, %v2726_v21 }
0x1da8   :  { %4120 = vpow2.f32 %v2565_v44  ;;  %v2577_v38 = vmul.f32 1.442695, %v2563_v47  ;;  %v2579_v40 = vmul.f32 1.442695, %v2564_v48  ;;  %3954 = vmatpush3.bf16.xpose.msk.msra.mxu1 %vm4279_vm3, %v3952_v13  ;;  %v4140_v44 = vld [vmem:[#allocation3 + $0x6] sm:$0x3] }
0x1da9   :  { %4122 = vpow2.f32 %v2567_v50  ;;  %3955 = vmatprep.subr.bf16.mxu1 %v4147_v39 }
0x1daa   :  { %4124 = vpow2.f32 %v2569_v56  ;;  %v4141_v56 = vld [vmem:[#allocation3 + $0x4] sm:$0x3] }
0x1dab   :  { %4126 = vpow2.f32 %v2571_v49 }
0x1dac   :  { %4128 = vpow2.f32 %v2573_v55 }
0x1dad   :  { %4130 = vpow2.f32 %v2575_v62 }
0x1dae   :  { %4132 = vpow2.f32 %v2577_v38 }
0x1daf   :  { %4134 = vpow2.f32 %v2579_v40 }
0x1db0   :  { %3958 = vmatpush3.bf16.xpose.msk.msra.mxu1 %vm4279_vm3, %v3956_v14 }
0x1db2   :  { %v4121_v17 = vpop.eup %4120 }
0x1db3   :  { %v4123_v23 = vpop.eup %4122  ;;  %v2581_v24 = vsel %vm1806_vm9, %v4121_v17, 0.0 }
0x1db4   :  { %v4125_v22 = vpop.eup %4124  ;;  %v2582_v28 = vsel %vm1806_vm9, %v4123_v23, 0.0 }
0x1db5   :  { %v4127_v41 = vpop.eup %4126  ;;  %v2583_v31 = vadd.f32 %v2582_v28, %v2581_v24  ;;  %v2584_v59 = vsel %vm1806_vm9, %v4125_v22, 0.0 }
0x1db6   :  { %v4129_v25 = vpop.eup %4128  ;;  %v2586_v37 = vsel %vm1806_vm9, %v4127_v41, 0.0 }
0x1db7   :  { %v2585_v58 = vadd.f32 %v2584_v59, %v2583_v31  ;;  %v4131_v18 = vpop.eup %4130  ;;  %v2588_v0 = vsel %vm1806_vm9, %v4129_v25, 0.0 }
0x1db8   :  { %v4133_v1 = vpop.eup %4132  ;;  %v2590_v63 = vsel %vm1806_vm9, %v4131_v18, 0.0 }
0x1db9   :  { %v2587_v60 = vadd.f32 %v2586_v37, %v2585_v58  ;;  %v4135_v4 = vpop.eup %4134  ;;  %v2592_v19 = vsel %vm1806_vm9, %v4133_v1, 0.0 }
0x1dba   :  { %v2594_v52 = vsel %vm1806_vm9, %v4135_v4, 0.0 }
0x1dbb   :  { %v2589_v2 = vadd.f32 %v2588_v0, %v2587_v60  ;;  %v4144_v0 = vld [vmem:[#allocation3 + $0xe] sm:$0x3] }
0x1dbd   :  { %v2591_v61 = vadd.f32 %v2590_v63, %v2589_v2  ;;  %v4145_v2 = vld [vmem:[#allocation3 + $0xc] sm:$0x3] }
0x1dbf   :  { %v2593_v6 = vadd.f32 %v2592_v19, %v2591_v61 }
0x1dc1   :  { %v2595_v5 = vadd.f32 %v2594_v52, %v2593_v6 }
0x1dc3   :  { %4136 = vrcp.f32 %v2595_v5 }
0x1dcd   :  { %v4137_v57 = vpop.eup %4136 }
0x1dce   :  { %v2598_v3 = vmul.f32 %v4137_v57, %v4123_v23  ;;  %v2597_v7 = vmul.f32 %v4137_v57, %v4121_v17  ;;  %v2600_v53 = vmul.f32 %v4137_v57, %v4127_v41  ;;  %v2599_v10 = vmul.f32 %v4137_v57, %v4125_v22  ;;  %v4142_v23 = vld [vmem:[#allocation3 + $0xa] sm:$0x3]  ;;  %v4143_v22 = vld [vmem:[#allocation3 + $0x8] sm:$0x3] }
0x1dcf   :  { %v2602_v8 = vmul.f32 %v4137_v57, %v4131_v18  ;;  %v2601_v12 = vmul.f32 %v4137_v57, %v4129_v25  ;;  %v2604_v11 = vmul.f32 %v4137_v57, %v4135_v4  ;;  %v2603_v51 = vmul.f32 %v4137_v57, %v4133_v1 }
0x1dd0   :  { %2619 = vperm.xlu1 %3971, %v2598_v3   ;;  %2607 = vperm.xlu0 %3970, %v2597_v7  }
0x1dd4   :  { %2643 = vperm.xlu1 %3971, %v2600_v53   ;;  %2631 = vperm.xlu0 %3970, %v2599_v10  }
0x1dd8   :  { %2667 = vperm.xlu1 %3971, %v2602_v8   ;;  %2655 = vperm.xlu0 %3970, %v2601_v12  }
0x1ddc   :  { %2691 = vperm.xlu1 %3971, %v2604_v11   ;;  %2679 = vperm.xlu0 %3970, %v2603_v51  }
0x1e4f   :  { %v2620_v16 = vpop.permute.xlu1 %2619  ;;  %v2608_v20 = vpop.permute.xlu0 %2607 }
0x1e50   :  { %v2628_v27 = vrot.slane %v2620_v16, %v4943_v42  ;;  %v2616_v29 = vrot.slane %v2608_v20, %v4943_v42 }
0x1e52   :  { %v2702_v39 = vmul.f32 %v4138_v30, %v2628_v27  ;;  %v2701_v45 = vmul.f32 %v4139_v32, %v2616_v29 }
0x1e53   :  { %v2644_v46 = vpop.permute.xlu1 %2643  ;;  %v2632_v33 = vpop.permute.xlu0 %2631 }
0x1e54   :  { %v2710_v34 = vsel %vm571_vm8, %v2702_v39, 0.0  ;;  %v2709_v35 = vsel %vm571_vm8, %v2701_v45, 0.0  ;;  %v2652_v36 = vrot.slane %v2644_v46, %v4943_v42  ;;  %v2640_v26 = vrot.slane %v2632_v33, %v4943_v42 }
0x1e55   :  { %v2711_v49 = vadd.f32 %v2710_v34, %v2709_v35 }
0x1e56   :  { %v2704_v50 = vmul.f32 %v4140_v44, %v2652_v36  ;;  %v2703_v43 = vmul.f32 %v4141_v56, %v2640_v26 }
0x1e57   :  { %v2668_v47 = vpop.permute.xlu1 %2667  ;;  %v2656_v55 = vpop.permute.xlu0 %2655 }
0x1e58   :  { %v2712_v48 = vsel %vm571_vm8, %v2703_v43, 0.0  ;;  %v2676_v62 = vrot.slane %v2668_v47, %v4943_v42  ;;  %v2664_v38 = vrot.slane %v2656_v55, %v4943_v42  ;;  %v2714_v17 = vsel %vm571_vm8, %v2704_v50, 0.0 }
0x1e59   :  { %v2713_v40 = vadd.f32 %v2712_v48, %v2711_v49 }
0x1e5a   :  { %v2706_v24 = vmul.f32 %v4142_v23, %v2676_v62  ;;  %v2705_v28 = vmul.f32 %v4143_v22, %v2664_v38 }
0x1e5b   :  { %v2715_v41 = vadd.f32 %v2714_v17, %v2713_v40  ;;  %v2692_v31 = vpop.permute.xlu1 %2691  ;;  %v2680_v59 = vpop.permute.xlu0 %2679 }
0x1e5c   :  { %v2716_v25 = vsel %vm571_vm8, %v2705_v28, 0.0  ;;  %v2700_v58 = vrot.slane %v2692_v31, %v4943_v42  ;;  %v2688_v37 = vrot.slane %v2680_v59, %v4943_v42  ;;  %v2718_v60 = vsel %vm571_vm8, %v2706_v24, 0.0  ;;  %v3031_v42 = vld [vmem:[%s5156_s10] ss:$0 sm:$0xff] }
0x1e5d   :  { %v2717_v18 = vadd.f32 %v2716_v25, %v2715_v41 }
0x1e5e   :  { %v2708_v1 = vmul.f32 %v4144_v0, %v2700_v58  ;;  %v2707_v63 = vmul.f32 %v4145_v2, %v2688_v37 }
0x1e5f   :  { %v2719_v4 = vadd.f32 %v2718_v60, %v2717_v18 }
0x1e60   :  { %v2720_v61 = vsel %vm571_vm8, %v2707_v63, 0.0  ;;  %v2722_v6 = vsel %vm571_vm8, %v2708_v1, 0.0 }
0x1e61   :  { %v2721_v19 = vadd.f32 %v2720_v61, %v2719_v4 }
0x1e63   :  { %v2723_v52 = vadd.f32 %v2722_v6, %v2721_v19 }
0x1e65   :  { %3597 = vmatmul.mubr.msk.f32.vlgmr.msra.gmra.mrb[10].mxu1 %vm216_vm2, %v2723_v52 }
0x1f38   :  { %v2809_v5 = vpop.f32.mrb[10].mxu1 }
0x1f39   :  { %v2813_v57 = vmax.f32 %v2809_v5, 0.0  ;;  %v3598_v3 = vpop.f32.mrb[11].mxu1 }
0x1f3b   :  { %v2821_v7 = vmul.f32 %v3031_v42, %v2813_v57 }
0x1f3d   :  { %v2822_v53 = vsel %vm571_vm8, %v2821_v7, 0.0 }
0x1f3e   :  { %2823 = vadd.xlane.f32.xlu0 %v2822_v53 }
0x1fcb   :  { %v2824_v10 = vpop.xlane.xlu0 %2823 }
0x1fcc   :  { %2826 = vst.msk [vmem:[%s5157_s11] sm:$0x3] %vm2825_vm10, %v2824_v10 }

</bundles_post_ra>
